<compile_context>
chip_gen: v6e
topology: v6e:2x2x1
jax: 0.10.0
libtpu: 0.0.40
codegen_flags: <defaults>
</compile_context>

<pallas_src>
import functools
import math

import jax
import jax.numpy as jnp
from jax.experimental import pallas as pl
from jax.experimental.pallas import tpu as pltpu


def _qst_grounding_kernel(qst_ref, data_ref,
                          m_dh_ref, m_hd_ref,
                          wq_ref, wkv_ref, wo_ref, w1_ref, w2_ref,
                          bq_ref, bkv_ref, bo_ref, b1_ref, b2_ref,
                          gamma_ref, beta_ref,
                          out_ref, *, nhead, s_valid):
    f32 = jnp.float32
    bf16 = jnp.bfloat16

    qst = qst_ref[...]                       # (TB, D)      f32
    x = data_ref[...]                        # (TB, Sp, D)  f32
    TB, Sp, D = x.shape
    hd = D // nhead

    x2_bf = x.reshape(TB * Sp, D).astype(bf16)

    # --- Q projection (1/sqrt(hd) scale folded into wq/bq by the wrapper) ---
    q = jnp.dot(qst.astype(bf16), wq_ref[...],
                preferred_element_type=f32) + bq_ref[...]                   # (TB, D)

    # --- K/V projection ---
    if len(wkv_ref.shape) == 2:
        # fused: one MXU pass with N=2D, lane-aligned split (D % 128 == 0)
        kv = jnp.dot(x2_bf, wkv_ref[...], preferred_element_type=f32) + bkv_ref[...]
        k3 = kv[:, :D].reshape(TB, Sp, D)
        v3 = kv[:, D:].reshape(TB, Sp, D)
    else:
        # stacked (2, D, D): two matmuls (avoids unaligned lane slices at small D)
        k3 = (jnp.dot(x2_bf, wkv_ref[0], preferred_element_type=f32)
              + bkv_ref[0]).reshape(TB, Sp, D)
        v3 = (jnp.dot(x2_bf, wkv_ref[1], preferred_element_type=f32)
              + bkv_ref[1]).reshape(TB, Sp, D)

    # --- per-head attention scores (query length is 1 per batch row) ---
    qk = q[:, None, :] * k3                                                 # (TB, Sp, D) f32
    if hd % 128 == 0:
        # lane-aligned heads: reduce over hd on the XLU, no tiny-N matmul
        scores = jnp.sum(qk.reshape(TB, Sp, nhead, hd), axis=-1)            # (TB, Sp, H)
    else:
        scores = jnp.dot(qk.reshape(TB * Sp, D), m_dh_ref[...],
                         preferred_element_type=f32).reshape(TB, Sp, nhead)

    if s_valid < Sp:                          # mask padded key positions
        s_idx = jax.lax.broadcasted_iota(jnp.int32, (1, Sp, 1), 1)
        scores = jnp.where(s_idx < s_valid, scores, -1e30)

    # --- softmax over the sequence axis ---
    scores = scores - jnp.max(scores, axis=1, keepdims=True)
    e = jnp.exp(scores)
    p = e * pl.reciprocal(jnp.sum(e, axis=1, keepdims=True), approx=True)   # (TB, Sp, H)

    # --- per-head weighted sum of V, heads concatenated ---
    if hd % 128 == 0:
        v4 = v3.reshape(TB, Sp, nhead, hd)
        attn_cat = jnp.sum(p[..., None] * v4, axis=1).reshape(TB, D)        # (TB, D)
    else:
        p_full = jnp.dot(p.reshape(TB * Sp, nhead), m_hd_ref[...],
                         preferred_element_type=f32).reshape(TB, Sp, D)
        attn_cat = jnp.sum(p_full * v3, axis=1)                             # (TB, D)

    # --- output projection + MLP: Linear(D, D/2) -> ReLU -> Linear(D/2, D) ---
    attn_out = jnp.dot(attn_cat.astype(bf16), wo_ref[...],
                       preferred_element_type=f32) + bo_ref[...]            # (TB, D)
    h1 = jnp.maximum(jnp.dot(attn_out.astype(bf16), w1_ref[...],
                             preferred_element_type=f32) + b1_ref[...], 0.0)
    mlp_out = jnp.dot(h1.astype(bf16), w2_ref[...],
                      preferred_element_type=f32) + b2_ref[...]             # (TB, D)

    # --- residual with sequence mean; dropout = identity (eval mode) ---
    data_mean = jnp.sum(x, axis=1) * (1.0 / s_valid)                        # (TB, D)
    feat = data_mean + mlp_out

    # --- LayerNorm(D), eps = 1e-5, f32 ---
    mu = jnp.mean(feat, axis=-1, keepdims=True)
    var = jnp.mean((feat - mu) ** 2, axis=-1, keepdims=True)
    normed = (feat - mu) * jax.lax.rsqrt(var + 1e-5)
    out_ref[...] = (normed * gamma_ref[...] + beta_ref[...]).astype(out_ref.dtype)


def _pick_tile_b(B, Sp, D, budget_bytes=36 * 1024 * 1024, cap=256):
    """Largest multiple-of-8 batch tile whose f32 working set (double-buffered
    (Sp, D) data tile + ~4 (Sp, D)-sized f32 intermediates per row) fits."""
    per_row = Sp * D * 4 * 6
    rows = (budget_bytes // max(per_row, 1)) // 8 * 8
    return int(max(8, min(cap, rows, ((B + 7) // 8) * 8)))


def qst_grounding_pallas(qst, data, params, nhead, tile_b=None,
                         vmem_limit_bytes=48 * 1024 * 1024):
    B, D = qst.shape
    _, S, _ = data.shape
    assert D % nhead == 0
    hd = D // nhead
    scale = 1.0 / math.sqrt(hd)

    # Pad S to a multiple of 8 so in-kernel reshapes are layout-preserving.
    Sp = ((S + 7) // 8) * 8
    if Sp != S:
        data = jnp.pad(data, ((0, 0), (0, Sp - S), (0, 0)))

    # Batch tile: multiple of 8, as large as the VMEM budget allows.
    if tile_b is None:
        tile_b = _pick_tile_b(B, Sp, D)
    tile_b = max(8, (tile_b // 8) * 8)
    n_tiles = -(-B // tile_b)
    Bp = n_tiles * tile_b
    if Bp != B:
        qst = jnp.pad(qst, ((0, Bp - B), (0, 0)))
        data = jnp.pad(data, ((0, Bp - B), (0, 0), (0, 0)))

    # --- weight prep (done once, outside the sequential grid) ---
    wq = (params["wq_t"] * scale).astype(jnp.bfloat16)            # (D, D), scale folded in
    bq = params["bq"] * scale                                     # (1, D)  f32
    if D % 128 == 0:
        wkv = jnp.concatenate([params["wk_t"], params["wv_t"]],
                              axis=1).astype(jnp.bfloat16)        # (D, 2D)
        bkv = jnp.concatenate([params["bk"], params["bv"]], axis=1)   # (1, 2D)
    else:
        wkv = jnp.stack([params["wk_t"], params["wv_t"]]).astype(jnp.bfloat16)  # (2, D, D)
        bkv = jnp.stack([params["bk"], params["bv"]])                           # (2, 1, D)
    wo = params["wo_t"].astype(jnp.bfloat16)
    w1 = params["w1_t"].astype(jnp.bfloat16)
    w2 = params["w2_t"].astype(jnp.bfloat16)

    # Constant head-membership matrices (only used when head_dim % 128 != 0).
    m_dh = (jnp.arange(D)[:, None] // hd ==
            jnp.arange(nhead)[None, :]).astype(jnp.float32)       # (D, H)
    m_hd = m_dh.T                                                 # (H, D)

    # Grid-invariant operands: whole-array resident in VMEM, not double-buffered.
    resident = pl.BlockSpec(memory_space=pltpu.MemorySpace.VMEM)
    in_specs = [
        pl.BlockSpec((tile_b, D), lambda b: (b, 0)),              # qst batch tile
        pl.BlockSpec((tile_b, Sp, D), lambda b: (b, 0, 0)),       # data batch tile
    ] + [resident] * 14
    out_spec = pl.BlockSpec((tile_b, D), lambda b: (b, 0))

    out = pl.pallas_call(
        functools.partial(_qst_grounding_kernel, nhead=nhead, s_valid=S),
        out_shape=jax.ShapeDtypeStruct((Bp, D), jnp.float32),
        grid_spec=pltpu.PrefetchScalarGridSpec(
            num_scalar_prefetch=0,
            grid=(n_tiles,),
            in_specs=in_specs,
            out_specs=out_spec,
        ),
        compiler_params=pltpu.CompilerParams(
            # TODO(synk): pltpu.CORE_PARALLEL here on v7x (2 TensorCores/chip).
            dimension_semantics=("parallel",),
            vmem_limit_bytes=vmem_limit_bytes),
    )(qst, data, m_dh, m_hd,
      wq, wkv, wo, w1, w2,
      bq, bkv, params["bo"], params["b1"], params["b2"],
      params["gamma"], params["beta"])
    return out[:B]


def init_params(key, d_model, nhead):
    """Deterministic synthetic parameter init (shapes match nn.MultiheadAttention /
    nn.Linear / nn.LayerNorm inside QstGrounding)."""
    D = d_model
    D2 = D // 2
    ks = jax.random.split(key, 6)
    s = 1.0 / jnp.sqrt(jnp.float32(D))
    in_proj_w = jax.random.normal(ks[0], (3 * D, D), jnp.float32) * s     # (3D, D)
    in_proj_b = jax.random.normal(ks[1], (3 * D,), jnp.float32) * 0.02    # (3D,)
    wo = jax.random.normal(ks[2], (D, D), jnp.float32) * s                # out_proj.weight
    bo = jax.random.normal(ks[3], (D,), jnp.float32) * 0.02
    # MLP: kaiming-normal weights, zero biases (matches _init_weights intent)
    w1 = jax.random.normal(ks[4], (D2, D), jnp.float32) * jnp.sqrt(2.0 / D)
    b1 = jnp.zeros((D2,), jnp.float32)
    w2 = jax.random.normal(ks[5], (D, D2), jnp.float32) * jnp.sqrt(2.0 / D2)
    b2 = jnp.zeros((D,), jnp.float32)
    gamma = jnp.ones((D,), jnp.float32)
    beta = jnp.zeros((D,), jnp.float32)

    wq, wk, wv = in_proj_w[:D], in_proj_w[D:2 * D], in_proj_w[2 * D:]
    bq, bk, bv = in_proj_b[:D], in_proj_b[D:2 * D], in_proj_b[2 * D:]

    return dict(
        wq_t=wq.T, wk_t=wk.T, wv_t=wv.T,
        bq=bq.reshape(1, D), bk=bk.reshape(1, D), bv=bv.reshape(1, D),
        wo_t=wo.T, bo=bo.reshape(1, D),
        w1_t=w1.T, b1=b1.reshape(1, D2),
        w2_t=w2.T, b2=b2.reshape(1, D),
        gamma=gamma.reshape(1, D), beta=beta.reshape(1, D),
    )


def qst_grounding_ref(qst, data, p, nhead):
    """Pure-JAX reference for the PyTorch forward (eval mode).  The five
    projection matmuls use bf16 operands / f32 accumulation to mirror the
    kernel's MXU numerics; attention core / softmax / LayerNorm are f32."""
    B, D = qst.shape
    S = data.shape[1]
    hd = D // nhead
    bf = jnp.bfloat16

    def mm(a, w):
        return jnp.dot(a.astype(bf), w.astype(bf), preferred_element_type=jnp.float32)

    q = mm(qst, p["wq_t"]) + p["bq"]                                        # (B, D)
    k = (mm(data.reshape(B * S, D), p["wk_t"]) + p["bk"]).reshape(B, S, D)
    v = (mm(data.reshape(B * S, D), p["wv_t"]) + p["bv"]).reshape(B, S, D)
    qh = q.reshape(B, nhead, hd)
    kh = k.reshape(B, S, nhead, hd)
    vh = v.reshape(B, S, nhead, hd)
    scores = jnp.einsum("bhd,bshd->bhs", qh, kh) / jnp.sqrt(jnp.float32(hd))
    pa = jax.nn.softmax(scores, axis=-1)
    oh = jnp.einsum("bhs,bshd->bhd", pa, vh).reshape(B, D)
    attn_out = mm(oh, p["wo_t"]) + p["bo"]
    h1 = jnp.maximum(mm(attn_out, p["w1_t"]) + p["b1"], 0.0)
    mlp_out = mm(h1, p["w2_t"]) + p["b2"]
    feat = data.mean(axis=1) + mlp_out
    mu = feat.mean(-1, keepdims=True)
    var = ((feat - mu) ** 2).mean(-1, keepdims=True)
    return (feat - mu) / jnp.sqrt(var + 1e-5) * p["gamma"] + p["beta"]


if __name__ == "__main__":
    # Small shapes consistent with the module (d_model divisible by nhead).
    # S=10 deliberately exercises the S-padding + key-masking path.
    B, S, D, NHEAD = 2, 10, 32, 4

    key = jax.random.PRNGKey(0)
    kq, kd, kp = jax.random.split(key, 3)
    qst = jax.random.normal(kq, (B, D), jnp.float32)
    data = jax.random.normal(kd, (B, S, D), jnp.float32)
    params = init_params(kp, D, NHEAD)

    out = qst_grounding_pallas(qst, data, params, NHEAD)
    out = jax.block_until_ready(out)

    ref = qst_grounding_ref(qst, data, params, NHEAD)
    assert out.shape == (B, D)
    err = float(jnp.max(jnp.abs(out - ref)))
    # Tolerance covers bf16 MXU operands, the approx-reciprocal softmax and the
    # folded-scale rounding vs the reference formulation; structural bugs show
    # up as O(1) differences on the unit-variance LayerNorm output.
    assert jnp.allclose(out, ref, atol=4e-2, rtol=4e-2), f"max abs diff {err}"
    print("KERNEL_OK")
</pallas_src>

<mosaic_0001>
module attributes {stable_mosaic.version = 11 : i64} {
  func.func @_qst_grounding_kernel(%arg0: i32, %arg1: memref<8x32xf32, #tpu.memory_space<vmem>>, %arg2: memref<8x16x32xf32, #tpu.memory_space<vmem>>, %arg3: memref<32x4xf32, #tpu.memory_space<vmem>>, %arg4: memref<4x32xf32, #tpu.memory_space<vmem>>, %arg5: memref<32x32xbf16, #tpu.memory_space<vmem>>, %arg6: memref<2x32x32xbf16, #tpu.memory_space<vmem>>, %arg7: memref<32x32xbf16, #tpu.memory_space<vmem>>, %arg8: memref<32x16xbf16, #tpu.memory_space<vmem>>, %arg9: memref<16x32xbf16, #tpu.memory_space<vmem>>, %arg10: memref<1x32xf32, #tpu.memory_space<vmem>>, %arg11: memref<2x1x32xf32, #tpu.memory_space<vmem>>, %arg12: memref<1x32xf32, #tpu.memory_space<vmem>>, %arg13: memref<1x16xf32, #tpu.memory_space<vmem>>, %arg14: memref<1x32xf32, #tpu.memory_space<vmem>>, %arg15: memref<1x32xf32, #tpu.memory_space<vmem>>, %arg16: memref<1x32xf32, #tpu.memory_space<vmem>>, %arg17: memref<8x32xf32, #tpu.memory_space<vmem>>) attributes {dimension_semantics = [#tpu.dimension_semantics<parallel>], iteration_bounds = array<i64: 1>, scalar_prefetch = 0 : i64, scratch_operands = 0 : i64, tpu.core_type = #tpu.core_type<tc>, window_params = [{transform_indices = @transform_0, window_bounds = array<i64: 8, 32>}, {transform_indices = @transform_1, window_bounds = array<i64: 8, 16, 32>}, {pipeline_mode = #tpu.pipeline_mode<synchronous>, transform_indices = @transform_2, window_bounds = array<i64: 32, 4>}, {pipeline_mode = #tpu.pipeline_mode<synchronous>, transform_indices = @transform_3, window_bounds = array<i64: 4, 32>}, {pipeline_mode = #tpu.pipeline_mode<synchronous>, transform_indices = @transform_4, window_bounds = array<i64: 32, 32>}, {pipeline_mode = #tpu.pipeline_mode<synchronous>, transform_indices = @transform_5, window_bounds = array<i64: 2, 32, 32>}, {pipeline_mode = #tpu.pipeline_mode<synchronous>, transform_indices = @transform_6, window_bounds = array<i64: 32, 32>}, {pipeline_mode = #tpu.pipeline_mode<synchronous>, transform_indices = @transform_7, window_bounds = array<i64: 32, 16>}, {pipeline_mode = #tpu.pipeline_mode<synchronous>, transform_indices = @transform_8, window_bounds = array<i64: 16, 32>}, {pipeline_mode = #tpu.pipeline_mode<synchronous>, transform_indices = @transform_9, window_bounds = array<i64: 1, 32>}, {pipeline_mode = #tpu.pipeline_mode<synchronous>, transform_indices = @transform_10, window_bounds = array<i64: 2, 1, 32>}, {pipeline_mode = #tpu.pipeline_mode<synchronous>, transform_indices = @transform_11, window_bounds = array<i64: 1, 32>}, {pipeline_mode = #tpu.pipeline_mode<synchronous>, transform_indices = @transform_12, window_bounds = array<i64: 1, 16>}, {pipeline_mode = #tpu.pipeline_mode<synchronous>, transform_indices = @transform_13, window_bounds = array<i64: 1, 32>}, {pipeline_mode = #tpu.pipeline_mode<synchronous>, transform_indices = @transform_14, window_bounds = array<i64: 1, 32>}, {pipeline_mode = #tpu.pipeline_mode<synchronous>, transform_indices = @transform_15, window_bounds = array<i64: 1, 32>}, {transform_indices = @transform_16, window_bounds = array<i64: 8, 32>}]} {
    %c0 = arith.constant 0 : index
    %c0_0 = arith.constant 0 : index
    %0 = vector.load %arg1[%c0, %c0_0] : memref<8x32xf32, #tpu.memory_space<vmem>>, vector<8x32xf32>
    %c0_1 = arith.constant 0 : index
    %c0_2 = arith.constant 0 : index
    %c0_3 = arith.constant 0 : index
    %1 = vector.load %arg2[%c0_1, %c0_2, %c0_3] : memref<8x16x32xf32, #tpu.memory_space<vmem>>, vector<8x16x32xf32>
    %2 = vector.shape_cast %1 : vector<8x16x32xf32> to vector<128x32xf32>
    %3 = arith.truncf %2 : vector<128x32xf32> to vector<128x32xbf16>
    %4 = arith.truncf %0 : vector<8x32xf32> to vector<8x32xbf16>
    %c0_4 = arith.constant 0 : index
    %c0_5 = arith.constant 0 : index
    %5 = vector.load %arg5[%c0_4, %c0_5] : memref<32x32xbf16, #tpu.memory_space<vmem>>, vector<32x32xbf16>
    %cst = arith.constant dense<0.000000e+00> : vector<8x32xf32>
    %6 = tpu.matmul %4, %5, %cst {dimension_numbers = #tpu.dot_dimension_numbers<[1], [0], [0], [1], [0, 0, 1, 1], [], []>} : vector<8x32xbf16>, vector<32x32xbf16>, vector<8x32xf32> -> vector<8x32xf32>
    %c0_6 = arith.constant 0 : index
    %c0_7 = arith.constant 0 : index
    %7 = vector.load %arg10[%c0_6, %c0_7] : memref<1x32xf32, #tpu.memory_space<vmem>>, vector<1x32xf32>
    %8 = vector.broadcast %7 : vector<1x32xf32> to vector<8x32xf32>
    %9 = arith.addf %6, %8 : vector<8x32xf32>
    %c0_8 = arith.constant 0 : index
    %c0_9 = arith.constant 0 : index
    %c0_10 = arith.constant 0 : index
    %10 = vector.load %arg6[%c0_8, %c0_9, %c0_10] : memref<2x32x32xbf16, #tpu.memory_space<vmem>>, vector<1x32x32xbf16>
    %11 = vector.shape_cast %10 : vector<1x32x32xbf16> to vector<32x32xbf16>
    %cst_11 = arith.constant dense<0.000000e+00> : vector<128x32xf32>
    %12 = tpu.matmul %3, %11, %cst_11 {dimension_numbers = #tpu.dot_dimension_numbers<[1], [0], [0], [1], [0, 0, 1, 1], [], []>} : vector<128x32xbf16>, vector<32x32xbf16>, vector<128x32xf32> -> vector<128x32xf32>
    %c0_12 = arith.constant 0 : index
    %c0_13 = arith.constant 0 : index
    %c0_14 = arith.constant 0 : index
    %13 = vector.load %arg11[%c0_12, %c0_13, %c0_14] : memref<2x1x32xf32, #tpu.memory_space<vmem>>, vector<1x1x32xf32>
    %14 = vector.shape_cast %13 : vector<1x1x32xf32> to vector<1x32xf32>
    %15 = vector.broadcast %14 : vector<1x32xf32> to vector<128x32xf32>
    %16 = arith.addf %12, %15 : vector<128x32xf32>
    %17 = vector.shape_cast %16 : vector<128x32xf32> to vector<8x16x32xf32>
    %c1 = arith.constant 1 : index
    %c0_15 = arith.constant 0 : index
    %c0_16 = arith.constant 0 : index
    %18 = vector.load %arg6[%c1, %c0_15, %c0_16] : memref<2x32x32xbf16, #tpu.memory_space<vmem>>, vector<1x32x32xbf16>
    %19 = vector.shape_cast %18 : vector<1x32x32xbf16> to vector<32x32xbf16>
    %cst_17 = arith.constant dense<0.000000e+00> : vector<128x32xf32>
    %20 = tpu.matmul %3, %19, %cst_17 {dimension_numbers = #tpu.dot_dimension_numbers<[1], [0], [0], [1], [0, 0, 1, 1], [], []>} : vector<128x32xbf16>, vector<32x32xbf16>, vector<128x32xf32> -> vector<128x32xf32>
    %c1_18 = arith.constant 1 : index
    %c0_19 = arith.constant 0 : index
    %c0_20 = arith.constant 0 : index
    %21 = vector.load %arg11[%c1_18, %c0_19, %c0_20] : memref<2x1x32xf32, #tpu.memory_space<vmem>>, vector<1x1x32xf32>
    %22 = vector.shape_cast %21 : vector<1x1x32xf32> to vector<1x32xf32>
    %23 = vector.broadcast %22 : vector<1x32xf32> to vector<128x32xf32>
    %24 = arith.addf %20, %23 : vector<128x32xf32>
    %25 = vector.shape_cast %24 : vector<128x32xf32> to vector<8x16x32xf32>
    %26 = vector.shape_cast %9 : vector<8x32xf32> to vector<8x1x32xf32>
    %27 = vector.broadcast %26 : vector<8x1x32xf32> to vector<8x16x32xf32>
    %28 = arith.mulf %27, %17 : vector<8x16x32xf32>
    %29 = vector.shape_cast %28 : vector<8x16x32xf32> to vector<128x32xf32>
    %c0_21 = arith.constant 0 : index
    %c0_22 = arith.constant 0 : index
    %30 = vector.load %arg3[%c0_21, %c0_22] : memref<32x4xf32, #tpu.memory_space<vmem>>, vector<32x4xf32>
    %cst_23 = arith.constant dense<0.000000e+00> : vector<128x4xf32>
    %31 = tpu.matmul %29, %30, %cst_23 {dimension_numbers = #tpu.dot_dimension_numbers<[1], [0], [0], [1], [0, 0, 1, 1], [], []>} : vector<128x32xf32>, vector<32x4xf32>, vector<128x4xf32> -> vector<128x4xf32>
    %32 = vector.shape_cast %31 : vector<128x4xf32> to vector<8x16x4xf32>
    %33 = tpu.iota {dimensions = array<i32: 1>} : vector<1x16x1xi32>
    %c10_i32 = arith.constant 10 : i32
    %34 = vector.broadcast %c10_i32 : i32 to vector<1x16x1xi32>
    %35 = arith.cmpi slt, %33, %34 : vector<1x16x1xi32>
    %cst_24 = arith.constant -1.000000e+30 : f32
    %36 = vector.shape_cast %35 : vector<1x16x1xi1> to vector<1x16x1xi1>
    %37 = vector.broadcast %36 : vector<1x16x1xi1> to vector<8x16x4xi1>
    %38 = vector.broadcast %cst_24 : f32 to vector<8x16x4xf32>
    %39 = arith.select %37, %32, %38 : vector<8x16x4xi1>, vector<8x16x4xf32>
    %cst_25 = arith.constant dense<0xFF800000> : vector<8x4xf32>
    %40 = vector.multi_reduction <maximumf>, %39, %cst_25 [1] : vector<8x16x4xf32> to vector<8x4xf32>
    %41 = vector.shape_cast %40 : vector<8x4xf32> to vector<8x1x4xf32>
    %42 = vector.broadcast %41 : vector<8x1x4xf32> to vector<8x16x4xf32>
    %43 = arith.subf %39, %42 : vector<8x16x4xf32>
    %44 = math.exp %43 : vector<8x16x4xf32>
    %cst_26 = arith.constant dense<0.000000e+00> : vector<8x4xf32>
    %45 = vector.multi_reduction <add>, %44, %cst_26 [1] : vector<8x16x4xf32> to vector<8x4xf32>
    %46 = vector.shape_cast %45 : vector<8x4xf32> to vector<8x1x4xf32>
    %47 = tpu.reciprocal %46 {approx = true} : vector<8x1x4xf32> -> vector<8x1x4xf32>
    %48 = vector.broadcast %47 : vector<8x1x4xf32> to vector<8x16x4xf32>
    %49 = arith.mulf %44, %48 : vector<8x16x4xf32>
    %50 = vector.shape_cast %49 : vector<8x16x4xf32> to vector<128x4xf32>
    %c0_27 = arith.constant 0 : index
    %c0_28 = arith.constant 0 : index
    %51 = vector.load %arg4[%c0_27, %c0_28] : memref<4x32xf32, #tpu.memory_space<vmem>>, vector<4x32xf32>
    %cst_29 = arith.constant dense<0.000000e+00> : vector<128x32xf32>
    %52 = tpu.matmul %50, %51, %cst_29 {dimension_numbers = #tpu.dot_dimension_numbers<[1], [0], [0], [1], [0, 0, 1, 1], [], []>} : vector<128x4xf32>, vector<4x32xf32>, vector<128x32xf32> -> vector<128x32xf32>
    %53 = vector.shape_cast %52 : vector<128x32xf32> to vector<8x16x32xf32>
    %54 = arith.mulf %53, %25 : vector<8x16x32xf32>
    %cst_30 = arith.constant dense<0.000000e+00> : vector<8x32xf32>
    %55 = vector.multi_reduction <add>, %54, %cst_30 [1] : vector<8x16x32xf32> to vector<8x32xf32>
    %56 = arith.truncf %55 : vector<8x32xf32> to vector<8x32xbf16>
    %c0_31 = arith.constant 0 : index
    %c0_32 = arith.constant 0 : index
    %57 = vector.load %arg7[%c0_31, %c0_32] : memref<32x32xbf16, #tpu.memory_space<vmem>>, vector<32x32xbf16>
    %cst_33 = arith.constant dense<0.000000e+00> : vector<8x32xf32>
    %58 = tpu.matmul %56, %57, %cst_33 {dimension_numbers = #tpu.dot_dimension_numbers<[1], [0], [0], [1], [0, 0, 1, 1], [], []>} : vector<8x32xbf16>, vector<32x32xbf16>, vector<8x32xf32> -> vector<8x32xf32>
    %c0_34 = arith.constant 0 : index
    %c0_35 = arith.constant 0 : index
    %59 = vector.load %arg12[%c0_34, %c0_35] : memref<1x32xf32, #tpu.memory_space<vmem>>, vector<1x32xf32>
    %60 = vector.broadcast %59 : vector<1x32xf32> to vector<8x32xf32>
    %61 = arith.addf %58, %60 : vector<8x32xf32>
    %62 = arith.truncf %61 : vector<8x32xf32> to vector<8x32xbf16>
    %c0_36 = arith.constant 0 : index
    %c0_37 = arith.constant 0 : index
    %63 = vector.load %arg8[%c0_36, %c0_37] : memref<32x16xbf16, #tpu.memory_space<vmem>>, vector<32x16xbf16>
    %cst_38 = arith.constant dense<0.000000e+00> : vector<8x16xf32>
    %64 = tpu.matmul %62, %63, %cst_38 {dimension_numbers = #tpu.dot_dimension_numbers<[1], [0], [0], [1], [0, 0, 1, 1], [], []>} : vector<8x32xbf16>, vector<32x16xbf16>, vector<8x16xf32> -> vector<8x16xf32>
    %c0_39 = arith.constant 0 : index
    %c0_40 = arith.constant 0 : index
    %65 = vector.load %arg13[%c0_39, %c0_40] : memref<1x16xf32, #tpu.memory_space<vmem>>, vector<1x16xf32>
    %66 = vector.broadcast %65 : vector<1x16xf32> to vector<8x16xf32>
    %67 = arith.addf %64, %66 : vector<8x16xf32>
    %cst_41 = arith.constant 0.000000e+00 : f32
    %68 = vector.broadcast %cst_41 : f32 to vector<8x16xf32>
    %69 = arith.maximumf %67, %68 : vector<8x16xf32>
    %70 = arith.truncf %69 : vector<8x16xf32> to vector<8x16xbf16>
    %c0_42 = arith.constant 0 : index
    %c0_43 = arith.constant 0 : index
    %71 = vector.load %arg9[%c0_42, %c0_43] : memref<16x32xbf16, #tpu.memory_space<vmem>>, vector<16x32xbf16>
    %cst_44 = arith.constant dense<0.000000e+00> : vector<8x32xf32>
    %72 = tpu.matmul %70, %71, %cst_44 {dimension_numbers = #tpu.dot_dimension_numbers<[1], [0], [0], [1], [0, 0, 1, 1], [], []>} : vector<8x16xbf16>, vector<16x32xbf16>, vector<8x32xf32> -> vector<8x32xf32>
    %c0_45 = arith.constant 0 : index
    %c0_46 = arith.constant 0 : index
    %73 = vector.load %arg14[%c0_45, %c0_46] : memref<1x32xf32, #tpu.memory_space<vmem>>, vector<1x32xf32>
    %74 = vector.broadcast %73 : vector<1x32xf32> to vector<8x32xf32>
    %75 = arith.addf %72, %74 : vector<8x32xf32>
    %cst_47 = arith.constant dense<0.000000e+00> : vector<8x32xf32>
    %76 = vector.multi_reduction <add>, %1, %cst_47 [1] : vector<8x16x32xf32> to vector<8x32xf32>
    %cst_48 = arith.constant 1.000000e-01 : f32
    %77 = vector.broadcast %cst_48 : f32 to vector<8x32xf32>
    %78 = arith.mulf %76, %77 : vector<8x32xf32>
    %79 = arith.addf %78, %75 : vector<8x32xf32>
    %cst_49 = arith.constant dense<0.000000e+00> : vector<8xf32>
    %80 = vector.multi_reduction <add>, %79, %cst_49 [1] : vector<8x32xf32> to vector<8xf32>
    %81 = vector.shape_cast %80 : vector<8xf32> to vector<8x1xf32>
    %cst_50 = arith.constant 3.200000e+01 : f32
    %82 = vector.broadcast %cst_50 : f32 to vector<8x1xf32>
    %83 = arith.divf %81, %82 : vector<8x1xf32>
    %84 = vector.broadcast %83 : vector<8x1xf32> to vector<8x32xf32>
    %85 = arith.subf %79, %84 : vector<8x32xf32>
    %86 = arith.mulf %85, %85 : vector<8x32xf32>
    %cst_51 = arith.constant dense<0.000000e+00> : vector<8xf32>
    %87 = vector.multi_reduction <add>, %86, %cst_51 [1] : vector<8x32xf32> to vector<8xf32>
    %88 = vector.shape_cast %87 : vector<8xf32> to vector<8x1xf32>
    %cst_52 = arith.constant 3.200000e+01 : f32
    %89 = vector.broadcast %cst_52 : f32 to vector<8x1xf32>
    %90 = arith.divf %88, %89 : vector<8x1xf32>
    %91 = vector.broadcast %83 : vector<8x1xf32> to vector<8x32xf32>
    %92 = arith.subf %79, %91 : vector<8x32xf32>
    %cst_53 = arith.constant 9.99999974E-6 : f32
    %93 = vector.broadcast %cst_53 : f32 to vector<8x1xf32>
    %94 = arith.addf %90, %93 : vector<8x1xf32>
    %95 = math.rsqrt %94 : vector<8x1xf32>
    %96 = vector.broadcast %95 : vector<8x1xf32> to vector<8x32xf32>
    %97 = arith.mulf %92, %96 : vector<8x32xf32>
    %c0_54 = arith.constant 0 : index
    %c0_55 = arith.constant 0 : index
    %98 = vector.load %arg15[%c0_54, %c0_55] : memref<1x32xf32, #tpu.memory_space<vmem>>, vector<1x32xf32>
    %99 = vector.broadcast %98 : vector<1x32xf32> to vector<8x32xf32>
    %100 = arith.mulf %97, %99 : vector<8x32xf32>
    %c0_56 = arith.constant 0 : index
    %c0_57 = arith.constant 0 : index
    %101 = vector.load %arg16[%c0_56, %c0_57] : memref<1x32xf32, #tpu.memory_space<vmem>>, vector<1x32xf32>
    %102 = vector.broadcast %101 : vector<1x32xf32> to vector<8x32xf32>
    %103 = arith.addf %100, %102 : vector<8x32xf32>
    %c0_58 = arith.constant 0 : index
    %c0_59 = arith.constant 0 : index
    %104 = vector.load %arg17[%c0_58, %c0_59] : memref<8x32xf32, #tpu.memory_space<vmem>>, vector<8x32xf32>
    tpu.vector_store %arg17[%c0_58, %c0_59], %103 {strides = array<i32>} : memref<8x32xf32, #tpu.memory_space<vmem>>, vector<8x32xf32>,
    return
  }
  func.func @transform_0(%arg0: i32) -> (i32, i32) {
    %c0_i32 = arith.constant 0 : i32
    %c0_i32_0 = arith.constant 0 : i32
    return %arg0, %c0_i32 : i32, i32
  }
  func.func @transform_1(%arg0: i32) -> (i32, i32, i32) {
    %c0_i32 = arith.constant 0 : i32
    %c0_i32_0 = arith.constant 0 : i32
    %c0_i32_1 = arith.constant 0 : i32
    return %arg0, %c0_i32, %c0_i32_0 : i32, i32, i32
  }
  func.func @transform_2(%arg0: i32) -> (i32, i32) {
    %c0_i32 = arith.constant 0 : i32
    %c0_i32_0 = arith.constant 0 : i32
    %c0_i32_1 = arith.constant 0 : i32
    return %c0_i32, %c0_i32_0 : i32, i32
  }
  func.func @transform_3(%arg0: i32) -> (i32, i32) {
    %c0_i32 = arith.constant 0 : i32
    %c0_i32_0 = arith.constant 0 : i32
    %c0_i32_1 = arith.constant 0 : i32
    return %c0_i32, %c0_i32_0 : i32, i32
  }
  func.func @transform_4(%arg0: i32) -> (i32, i32) {
    %c0_i32 = arith.constant 0 : i32
    %c0_i32_0 = arith.constant 0 : i32
    %c0_i32_1 = arith.constant 0 : i32
    return %c0_i32, %c0_i32_0 : i32, i32
  }
  func.func @transform_5(%arg0: i32) -> (i32, i32, i32) {
    %c0_i32 = arith.constant 0 : i32
    %c0_i32_0 = arith.constant 0 : i32
    %c0_i32_1 = arith.constant 0 : i32
    %c0_i32_2 = arith.constant 0 : i32
    return %c0_i32, %c0_i32_0, %c0_i32_1 : i32, i32, i32
  }
  func.func @transform_6(%arg0: i32) -> (i32, i32) {
    %c0_i32 = arith.constant 0 : i32
    %c0_i32_0 = arith.constant 0 : i32
    %c0_i32_1 = arith.constant 0 : i32
    return %c0_i32, %c0_i32_0 : i32, i32
  }
  func.func @transform_7(%arg0: i32) -> (i32, i32) {
    %c0_i32 = arith.constant 0 : i32
    %c0_i32_0 = arith.constant 0 : i32
    %c0_i32_1 = arith.constant 0 : i32
    return %c0_i32, %c0_i32_0 : i32, i32
  }
  func.func @transform_8(%arg0: i32) -> (i32, i32) {
    %c0_i32 = arith.constant 0 : i32
    %c0_i32_0 = arith.constant 0 : i32
    %c0_i32_1 = arith.constant 0 : i32
    return %c0_i32, %c0_i32_0 : i32, i32
  }
  func.func @transform_9(%arg0: i32) -> (i32, i32) {
    %c0_i32 = arith.constant 0 : i32
    %c0_i32_0 = arith.constant 0 : i32
    %c0_i32_1 = arith.constant 0 : i32
    return %c0_i32, %c0_i32_0 : i32, i32
  }
  func.func @transform_10(%arg0: i32) -> (i32, i32, i32) {
    %c0_i32 = arith.constant 0 : i32
    %c0_i32_0 = arith.constant 0 : i32
    %c0_i32_1 = arith.constant 0 : i32
    %c0_i32_2 = arith.constant 0 : i32
    return %c0_i32, %c0_i32_0, %c0_i32_1 : i32, i32, i32
  }
  func.func @transform_11(%arg0: i32) -> (i32, i32) {
    %c0_i32 = arith.constant 0 : i32
    %c0_i32_0 = arith.constant 0 : i32
    %c0_i32_1 = arith.constant 0 : i32
    return %c0_i32, %c0_i32_0 : i32, i32
  }
  func.func @transform_12(%arg0: i32) -> (i32, i32) {
    %c0_i32 = arith.constant 0 : i32
    %c0_i32_0 = arith.constant 0 : i32
    %c0_i32_1 = arith.constant 0 : i32
    return %c0_i32, %c0_i32_0 : i32, i32
  }
  func.func @transform_13(%arg0: i32) -> (i32, i32) {
    %c0_i32 = arith.constant 0 : i32
    %c0_i32_0 = arith.constant 0 : i32
    %c0_i32_1 = arith.constant 0 : i32
    return %c0_i32, %c0_i32_0 : i32, i32
  }
  func.func @transform_14(%arg0: i32) -> (i32, i32) {
    %c0_i32 = arith.constant 0 : i32
    %c0_i32_0 = arith.constant 0 : i32
    %c0_i32_1 = arith.constant 0 : i32
    return %c0_i32, %c0_i32_0 : i32, i32
  }
  func.func @transform_15(%arg0: i32) -> (i32, i32) {
    %c0_i32 = arith.constant 0 : i32
    %c0_i32_0 = arith.constant 0 : i32
    %c0_i32_1 = arith.constant 0 : i32
    return %c0_i32, %c0_i32_0 : i32, i32
  }
  func.func @transform_16(%arg0: i32) -> (i32, i32) {
    %c0_i32 = arith.constant 0 : i32
    %c0_i32_0 = arith.constant 0 : i32
    return %arg0, %c0_i32 : i32, i32
  }
}

</mosaic_0001>

<bundles_post_ra>
// kernel: tpu_custom_call.1
= control target key start
LH: loop header
LB: loop body
LE: loop exit
PB: predicated region body
PF: predicated region fallthrough
CT: control target
= control target key end

     0   :  { %s2849_s0 = inlined_call_operand.hbm [shape: f32[8,32], index: 0, kind: input, shape index: {}]   ;;  %s2850_s1 = inlined_call_operand.hbm [shape: f32[8,16,32], index: 1, kind: input, shape index: {}]   ;;  %s2851_s2 = inlined_call_operand.vmem [shape: f32[32,4], index: 2, kind: input, shape index: {}]   ;;  %s2852_s3 = inlined_call_operand.hbm [shape: f32[4,32], index: 3, kind: input, shape index: {}]   ;;  %s2853_s4 = inlined_call_operand.vmem [shape: bf16[32,32], index: 4, kind: input, shape index: {}]   ;;  %s2854_s5 = inlined_call_operand.vmem [shape: bf16[2,32,32], index: 5, kind: input, shape index: {}]   ;;  %s2855_s6 = inlined_call_operand.vmem [shape: bf16[32,32], index: 6, kind: input, shape index: {}]   ;;  %s2856_s7 = inlined_call_operand.vmem [shape: bf16[32,16], index: 7, kind: input, shape index: {}]   ;;  %s2857_s8 = inlined_call_operand.hbm [shape: bf16[16,32], index: 8, kind: input, shape index: {}]   ;;  %s2858_s9 = inlined_call_operand.vmem [shape: f32[1,32], index: 9, kind: input, shape index: {}]   ;;  %s2859_s10 = inlined_call_operand.vmem [shape: f32[2,1,32], index: 10, kind: input, shape index: {}]   ;;  %s2860_s11 = inlined_call_operand.vmem [shape: f32[1,32], index: 11, kind: input, shape index: {}]   ;;  %s2861_s12 = inlined_call_operand.vmem [shape: f32[1,16], index: 12, kind: input, shape index: {}]   ;;  %s2862_s13 = inlined_call_operand.vmem [shape: f32[1,32], index: 13, kind: input, shape index: {}]   ;;  %s2863_s14 = inlined_call_operand.vmem [shape: f32[1,32], index: 14, kind: input, shape index: {}]   ;;  %s2864_s15 = inlined_call_operand.vmem [shape: f32[1,32], index: 15, kind: input, shape index: {}]   ;;  %s2865_s16 = inlined_call_operand.hbm [shape: f32[8,32], index: 16, kind: output, shape index: {}]  }
   0x1   :  { %2866 = sst [smem:[#allocation15_spill]] %s2849_s0 }
   0x2   :  { %21 = vsyncpa [#allocation3], 0 }
   0x3   :  { %22 = vsyncpa [#allocation6], 0 }
   0x4   :  { %23 = vsyncpa [#allocation9], 0 }
   0x5   :  { %24 = vsyncpa [#allocation4], 0  ;;  %s2271_s21 = smov [#allocation5]  }
   0x6   :  { %s40_s22 = sshll.u32 %s2271_s21, 4  ;;  %s41_s22 = int_to_ptr.vmem [resolvable:$true] %s40_s22 }
   0x7   :  { %s2171_s23 = scalar_lea.vmem %s41_s22, 2048  ;;  %p2176_p1 = scmp.lt.s32.totalorder %s41_s22, %s41_s22 }
   0x8   :  { %p2172_p0 = scmp.ne.s32.totalorder %s41_s22, %s2171_s23  ;;  %p2177_p2 = scmp.lt.s32.totalorder %s2171_s23, %s2171_s23 }
   0xa   :  { %p2178_p3 = por %p2177_p2, %p2176_p1 }
   0xc   :  { %p2179_p4 = pnand %p2178_p3, %p2172_p0 }
   0xe   :  { %2182 = shalt.err (!%p2179_p4)
}
   0xf   :  { %s2272_s24 = smov 128   ;;  %s2273_s25 = smov 8  }
  0x10   :  { %46 = dma.hbm_to_vmem [thread:$0]  %s2850_s1, 2048, %s41_s22, [#allocation6], %s2272_s24, %s2272_s24, %s2273_s25  }
  0x11   :  { %s2274_s28 = smov [#allocation2]   ;;  %s2275_s30 = smov [#allocation7]  }
  0x12   :  { %s31_s29 = sshll.u32 %s2274_s28, 4  ;;  %s55_s0 = sshll.u32 %s2275_s30, 4  ;;  %s32_s29 = int_to_ptr.vmem [resolvable:$true] %s31_s29  ;;  %s56_s0 = int_to_ptr.vmem [resolvable:$true] %s55_s0 }
  0x13   :  { %s2191_s17 = scalar_lea.vmem %s32_s29, 128  ;;  %p2196_p6 = scmp.lt.s32.totalorder %s32_s29, %s32_s29 }
  0x14   :  { %p2192_p5 = scmp.ne.s32.totalorder %s32_s29, %s2191_s17  ;;  %p2197_p7 = scmp.lt.s32.totalorder %s2191_s17, %s2191_s17 }
  0x16   :  { %p2198_p8 = por %p2197_p7, %p2196_p6 }
  0x18   :  { %p2199_p9 = pnand %p2198_p8, %p2192_p5 }
  0x1a   :  { %2202 = shalt.err (!%p2199_p9)
}
  0x1b   :  { %s2867_s20 = sld [smem:[#allocation15_spill]]  ;;  %s2211_s21 = scalar_lea.vmem %s56_s0, 64 }
  0x1c   :  { %p2212_p10 = scmp.ne.s32.totalorder %s56_s0, %s2211_s21  ;;  %p2216_p11 = scmp.lt.s32.totalorder %s56_s0, %s56_s0 }
  0x1d   :  { %p2217_p12 = scmp.lt.s32.totalorder %s2211_s21, %s2211_s21 }
  0x1f   :  { %p2218_p13 = por %p2217_p12, %p2216_p11 }
  0x21   :  { %34 = dma.hbm_to_vmem [thread:$0]  %s2867_s20, 128, %s32_s29, [#allocation3]  }
  0x22   :  { %p2219_p0 = pnand %p2218_p13, %p2212_p10 }
  0x24   :  { %2222 = shalt.err (!%p2219_p0)
}
  0x25   :  { %58 = dma.hbm_to_vmem [thread:$0]  %s2852_s3, 64, %s56_s0, [#allocation6]  }
  0x26   :  { %s2276_s23 = smov [#allocation8]  }
  0x27   :  { %s72_s24 = sshll.u32 %s2276_s23, 4  ;;  %s73_s24 = int_to_ptr.vmem [resolvable:$true] %s72_s24 }
  0x28   :  { %s2231_s25 = scalar_lea.vmem %s73_s24, 128  ;;  %p2236_p2 = scmp.lt.s32.totalorder %s73_s24, %s73_s24 }
  0x29   :  { %p2232_p1 = scmp.ne.s32.totalorder %s73_s24, %s2231_s25  ;;  %p2237_p3 = scmp.lt.s32.totalorder %s2231_s25, %s2231_s25 }
  0x2b   :  { %p2238_p4 = por %p2237_p3, %p2236_p2 }
  0x2d   :  { %p2239_p5 = pnand %p2238_p4, %p2232_p1 }
  0x2f   :  { %2242 = shalt.err (!%p2239_p5)
}
  0x30   :  { %s2277_s26 = smov 64   ;;  %s2278_s27 = smov 4  }
  0x31   :  { %78 = dma.hbm_to_vmem [thread:$0]  %s2857_s8, 128, %s73_s24, [#allocation9], %s2277_s26, %s2277_s26, %s2278_s27  }
  0x32   :  { %2263 = dma.done.wait [#allocation3], 128  }
  0x33   :  { %2264 = vsyncadd [#allocation3], 4294967168 }
  0x34   :  { %2265 = dma.done.wait [#allocation6], 2112  }
  0x35   :  { %2266 = vsyncadd [#allocation6], 4294965184 }
  0x36   :  { %2267 = dma.done.wait [#allocation9], 128  }
  0x37   :  { %2268 = vsyncadd [#allocation9], 4294967168  ;;  %v2279_v0 = vmov 0.0   ;;  %vm2280_vm0 = vmmov 0   ;;  %v2102_v1 = vld [vmem:[%s2853_s4 + $0x8] sm:$0xff]   ;;  %v2104_v3 = vld [vmem:[%s2853_s4] sm:$0xff]   ;;  %v470_v61 = vlaneseq }
  0x38   :  { %1962 = vmatprep.subr.bf16.mxu0 %v2279_v0  ;;  %1966 = vmatprep.mubr.msk.bf16.mxu0 %vm2280_vm0, %v2279_v0  ;;  %v2103_v2 = vld [vmem:[%s2854_s5 + $0x8] sm:$0xff]   ;;  %v2105_v4 = vld [vmem:[%s2854_s5] sm:$0xff]   ;;  %vm155_vm1 = vcmask 261120   ;;  %v108_v7 = vld [vmem:[#allocation5 + $0x8] sm:$0xff]  ;;  %v2281_v59 = vmov 1966171168  }
  0x39   :  { %1963 = vmatpush3.bf16.msra.mxu0 %v2102_v1  ;;  %1970 = vmatprep.subr.bf16.mxu1 %v2103_v2  ;;  %v106_v5 = vld [vmem:[#allocation2] sm:$0xff]  ;;  %v107_v6 = vld [vmem:[#allocation5] sm:$0xff]  ;;  %v1530_v11 = vsel %vm155_vm1, %v108_v7, 0.0  ;;  %v109_v12 = vld [vmem:[#allocation5 + $0x10] sm:$0xff]  ;;  %v468_v60 = vunpack.c.l.s4 %v2281_v59  ;;  %v2472_v63 = vshrl.u32 %v470_v61, 7  ;;  %vm1059_vm2 = vcmask 1043456  }
  0x3a   :  { %1964 = vmatprep.subr.bf16.mxu0 %v2279_v0  ;;  %1971 = vmatpush3.bf16.msra.mxu1 %v2103_v2  ;;  %v131_v8 = vpack.c.bf16 %v106_v5, %v106_v5  ;;  %v123_v9 = vpack.c.bf16 %v108_v7, %v107_v6  ;;  %v1529_v10 = vsel %vm155_vm1, %v107_v6, 0.0  ;;  %v110_v13 = vld [vmem:[#allocation5 + $0x18] sm:$0xff]  ;;  %v111_v14 = vld [vmem:[#allocation5 + $0x20] sm:$0xff]  ;;  %v1538_v16 = vsel %vm155_vm1, %v109_v12, 0.0  ;;  %v112_v18 = vld [vmem:[#allocation5 + $0x28] sm:$0xff] }
  0x3b   :  { %1972 = vmatprep.subr.bf16.mxu1 %v2105_v4  ;;  %v2398_v15 = vadd.f32 %v1530_v11, %v1529_v10  ;;  %v1539_v17 = vsel %vm155_vm1, %v110_v13, 0.0  ;;  %v2403_v19 = vpack.c.bf16 %v110_v13, %v109_v12  ;;  %v1547_v21 = vsel %vm155_vm1, %v111_v14, 0.0  ;;  %v113_v23 = vld [vmem:[#allocation5 + $0x30] sm:$0xff]  ;;  %v114_v26 = vld [vmem:[#allocation5 + $0x38] sm:$0xff]  ;;  %v115_v28 = vld [vmem:[#allocation5 + $0x40] sm:$0xff] }
  0x3c   :  { %1974 = vmatprep.mubr.msk.bf16.mxu1 %vm155_vm1, %v123_v9  ;;  %v2405_v20 = vadd.f32 %v1539_v17, %v1538_v16  ;;  %v1548_v22 = vsel %vm155_vm1, %v112_v18, 0.0  ;;  %v2409_v24 = vpack.c.bf16 %v112_v18, %v111_v14  ;;  %v1556_v27 = vsel %vm155_vm1, %v113_v23, 0.0  ;;  %v116_v30 = vld [vmem:[#allocation5 + $0x48] sm:$0xff]  ;;  %v574_v32 = vld [vmem:[%s2851_s2 + $0x18] sm:$0xff]  ;;  %v118_v38 = vld [vmem:[#allocation5 + $0x58] sm:$0xff] }
  0x3d   :  { %1965 = vmatpush3.bf16.msra.mxu0 %v2104_v3  ;;  %v2411_v25 = vadd.f32 %v1548_v22, %v1547_v21  ;;  %v1557_v29 = vsel %vm155_vm1, %v114_v26, 0.0  ;;  %v1565_v31 = vsel %vm155_vm1, %v115_v28, 0.0  ;;  %v1566_v34 = vsel %vm155_vm1, %v116_v30, 0.0  ;;  %v117_v35 = vld [vmem:[#allocation5 + $0x50] sm:$0xff]  ;;  %v573_v36 = vld [vmem:[%s2851_s2 + $0x10] sm:$0xff]  ;;  %v572_v41 = vld [vmem:[%s2851_s2 + $0x8] sm:$0xff] }
  0x3e   :  { %1973 = vmatpush3.bf16.msra.mxu1 %v2105_v4  ;;  %v2420_v33 = vadd.f32 %v1557_v29, %v1556_v27  ;;  %v2429_v37 = vadd.f32 %v1566_v34, %v1565_v31  ;;  %v1574_v39 = vsel %vm155_vm1, %v117_v35, 0.0  ;;  %v1575_v40 = vsel %vm155_vm1, %v118_v38, 0.0  ;;  %v119_v43 = vld [vmem:[#allocation5 + $0x60] sm:$0xff]  ;;  %v120_v44 = vld [vmem:[#allocation5 + $0x68] sm:$0xff]  ;;  %v121_v50 = vld [vmem:[#allocation5 + $0x70] sm:$0xff] }
  0x3f   :  { %2010 = vmatprep.subr.mxu1 %v574_v32  ;;  %v2438_v42 = vadd.f32 %v1575_v40, %v1574_v39  ;;  %v1583_v45 = vsel %vm155_vm1, %v119_v43, 0.0  ;;  %v2441_v46 = vpack.c.bf16 %v114_v26, %v113_v23  ;;  %v1584_v47 = vsel %vm155_vm1, %v120_v44, 0.0  ;;  %v122_v52 = vld [vmem:[#allocation5 + $0x78] sm:$0xff] }
  0x40   :  { %1967 = vmatmul.mubr.msk.bf16.vlgmr.msra.gmra.mxu0 %vm155_vm1, %v131_v8  ;;  %v2444_v48 = vpack.c.bf16 %v116_v30, %v115_v28  ;;  %v2446_v49 = vadd.f32 %v1584_v47, %v1583_v45  ;;  %v1592_v51 = vsel %vm155_vm1, %v121_v50, 0.0  ;;  %v1593_v53 = vsel %vm155_vm1, %v122_v52, 0.0  ;;  %v571_v58 = vld [vmem:[%s2851_s2] sm:$0xff] }
  0x41   :  { %1994 = vmatprep.mubr.msk.bf16.mxu0 %vm155_vm1, %v123_v9  ;;  %1975 = vmatmul.mubr.msk.bf16.vlgmr.msra.gmra.mxu1 %vm155_vm1, %v2403_v19  ;;  %v2454_v54 = vadd.f32 %v1593_v53, %v1592_v51  ;;  %v2456_v55 = vpack.c.bf16 %v118_v38, %v117_v35  ;;  %v2458_v56 = vpack.c.bf16 %v120_v44, %v119_v43  ;;  %v469_v62 = vunpack.c.0.s8 %v468_v60  ;;  %v1817_v1 = vld [vmem:[%s2858_s9] ss:$0 sm:$0xff] }
  0x42   :  { %1978 = vmatprep.mubr.msk.bf16.mxu1 %vm155_vm1, %v2409_v24  ;;  %2011 = vmatpush3.msra.mxu1 %v574_v32  ;;  %v2464_v57 = vpack.c.bf16 %v122_v52, %v121_v50  ;;  %v2479_v8 = vsub.s32 0, %v2472_v63  ;;  %v2484_v13 = vld [vmem:[%s2859_s10] ss:$0 sm:$0xff]  ;;  %vm793_vm4 = vcmask 31744   ;;  %vm1331_vm5 = vcmask 1041409  }
  0x43   :  { %2012 = vmatprep.subr.mxu1 %v573_v36  ;;  %v472_v2 = vsub.s32 %v469_v62, %v2472_v63  ;;  %vm1333_vm6 = vcmask 1042434   ;;  %vm1335_vm7 = vcmask 1043459   ;;  %vm1337_vm8 = vcmask 1044484  }
  0x44   :  { %2013 = vmatpush3.msra.mxu1 %v573_v36  ;;  %vm1339_vm9 = vcmask 1045509   ;;  %vm1341_vm10 = vcmask 1046534   ;;  %vm1343_vm11 = vcmask 1047559   ;;  %vm1485_vm12 = vcmask 130048  }
  0x45   :  { %2014 = vmatprep.subr.mxu1 %v572_v41 }
  0x46   :  { %2015 = vmatpush3.msra.mxu1 %v572_v41 }
  0x47   :  { %2016 = vmatprep.subr.mxu1 %v571_v58 }
  0x48   :  { %2017 = vmatpush3.msra.mxu1 %v571_v58 }
  0x49   :  { %1979 = vmatmul.mubr.msk.bf16.gmra.mxu1 %vm155_vm1, %v2441_v46  ;;  %2068 = vmatprep.subr.bf16.mxu1 %v2279_v0 }
  0x4a   :  { %1982 = vmatprep.mubr.msk.bf16.mxu1 %vm155_vm1, %v2444_v48 }
  0x51   :  { %1983 = vmatmul.mubr.msk.bf16.gmra.mxu1 %vm155_vm1, %v2456_v55 }
  0x52   :  { %1986 = vmatprep.mubr.msk.bf16.mxu1 %vm155_vm1, %v2458_v56 }
  0x59   :  { %1987 = vmatmul.mubr.msk.bf16.gmra.mxu1 %vm155_vm1, %v2464_v57 }
 0x100   :  { %v193_v3 = vpop.f32.mrf.mxu0 }
 0x101   :  { %v194_v4 = vadd.f32 %v1817_v1, %v193_v3  ;;  %v1976_v5 = vpop.f32.mrf.mxu1 }
 0x102   :  { %v1968_v6 = vpop.f32.mrf.mxu0  ;;  %v289_v23 = vadd.f32 %v1976_v5, %v2484_v13 }
 0x103   :  { %v473_v7 = vrot.slane %v194_v4, %v472_v2  ;;  %v280_v9 = vpop.f32.mrf.mxu1  ;;  %v466_v22 = vcombine.high %v194_v4, %v194_v4 }
 0x104   :  { %v196_v10 = vpop.f32.mrf.mxu0  ;;  %v281_v18 = vadd.f32 %v2484_v13, %v280_v9 }
 0x105   :  { %v481_v11 = vcombine.high %v473_v7, %v473_v7  ;;  %v489_v12 = vrot.slane %v473_v7, %v472_v2  ;;  %v1977_v14 = vpop.f32.mrf.mxu1  ;;  %v480_v38 = vrot.slane %v466_v22, %v472_v2 }
 0x106   :  { %v1969_v16 = vpop.f32.mrf.mxu0  ;;  %v292_v39 = vadd.f32 %v1977_v14, %v2484_v13 }
 0x107   :  { %v503_v17 = vrot.slane %v481_v11, %v472_v2  ;;  %v518_v21 = vrot.slane %v489_v12, %v2479_v8  ;;  %v283_v26 = vpop.f32.mrf.mxu1  ;;  %v511_v30 = vcombine.high %v489_v12, %v489_v12  ;;  %v496_v53 = vrot.slane %v480_v38, %v472_v2 }
 0x108   :  { %v284_v29 = vadd.f32 %v2484_v13, %v283_v26  ;;  %v482_v58 = vcombine.high %v480_v38, %v480_v38 }
 0x109   :  { %v522_v27 = vrot.slane %v503_v17, %v2479_v8  ;;  %v555_v28 = vmul.f32 %v518_v21, %v281_v18  ;;  %v1980_v31 = vpop.f32.mrf.mxu1  ;;  %v513_v35 = vcombine.high %v503_v17, %v503_v17  ;;  %v526_v41 = vrot.slane %v511_v30, %v2479_v8 }
 0x10a   :  { %v556_v34 = vmul.f32 %v518_v21, %v284_v29  ;;  %v305_v47 = vadd.f32 %v1980_v31, %v2484_v13  ;;  %v534_v4 = vrot.slane %v496_v53, %v2479_v8  ;;  %v510_v5 = vrot.slane %v482_v58, %v472_v2 }
 0x10b   :  { %v557_v32 = vmul.f32 %v522_v27, %v289_v23  ;;  %2018 = vmatprep.mubr.msk.f32.mxu1 %vm155_vm1, %v555_v28  ;;  %v296_v36 = vpop.f32.mrf.mxu1  ;;  %v558_v44 = vmul.f32 %v522_v27, %v292_v39  ;;  %v530_v50 = vrot.slane %v513_v35, %v2479_v8  ;;  %v512_v14 = vcombine.high %v496_v53, %v496_v53 }
 0x10c   :  { %v297_v40 = vadd.f32 %v2484_v13, %v296_v36  ;;  %2019 = vmatmul.mubr.msk.f32.vlgmr.msra.gmra.mxu1 %vm155_vm1, %v556_v34  ;;  %v538_v16 = vrot.slane %v510_v5, %v2479_v8  ;;  %v514_v27 = vcombine.high %v510_v5, %v510_v5 }
 0x10d   :  { %v1981_v43 = vpop.f32.mrf.mxu1  ;;  %2021 = vmatprep.mubr.msk.f32.mxu1 %vm155_vm1, %v557_v32  ;;  %v561_v62 = vmul.f32 %v530_v50, %v305_v47  ;;  %v542_v26 = vrot.slane %v512_v14, %v2479_v8 }
 0x10e   :  { %v559_v45 = vmul.f32 %v526_v41, %v297_v40  ;;  %v308_v60 = vadd.f32 %v1981_v43, %v2484_v13  ;;  %v546_v35 = vrot.slane %v514_v27, %v2479_v8  ;;  %v2106_v8 = vld [vmem:[%s2854_s5 + $0x18] sm:$0xff]  }
 0x10f   :  { %v299_v51 = vpop.f32.mrf.mxu1  ;;  %1990 = vmatprep.subr.bf16.mxu0 %v2106_v8 }
 0x110   :  { %v300_v52 = vadd.f32 %v2484_v13, %v299_v51  ;;  %2022 = vmatmul.mubr.msk.f32.gmra.mxu1 %vm155_vm1, %v558_v44  ;;  %v562_v7 = vmul.f32 %v530_v50, %v308_v60  ;;  %1991 = vmatpush3.bf16.msra.mxu0 %v2106_v8 }
 0x111   :  { %v1984_v59 = vpop.f32.mrf.mxu1  ;;  %2024 = vmatprep.mubr.msk.f32.mxu1 %vm155_vm1, %v559_v45 }
 0x112   :  { %v560_v61 = vmul.f32 %v526_v41, %v300_v52  ;;  %v321_v10 = vadd.f32 %v1984_v59, %v2484_v13  ;;  %v1010_v41 = vld [vmem:[#allocation7] sm:$0xf] }
 0x113   :  { %v312_v1 = vpop.f32.mrf.mxu1 }
 0x114   :  { %v313_v3 = vadd.f32 %v2484_v13, %v312_v1  ;;  %2025 = vmatmul.mubr.msk.f32.gmra.mxu1 %vm155_vm1, %v560_v61  ;;  %v565_v21 = vmul.f32 %v538_v16, %v321_v10 }
 0x115   :  { %v1985_v6 = vpop.f32.mrf.mxu1  ;;  %2027 = vmatprep.mubr.msk.f32.mxu1 %vm155_vm1, %v561_v62 }
 0x116   :  { %v563_v9 = vmul.f32 %v534_v4, %v313_v3  ;;  %v324_v2 = vadd.f32 %v1985_v6, %v2484_v13 }
 0x117   :  { %v315_v11 = vpop.f32.mrf.mxu1 }
 0x118   :  { %v316_v12 = vadd.f32 %v2484_v13, %v315_v11  ;;  %2028 = vmatmul.mubr.msk.f32.gmra.mxu1 %vm155_vm1, %v562_v7  ;;  %v566_v29 = vmul.f32 %v538_v16, %v324_v2 }
 0x119   :  { %v1988_v17 = vpop.f32.mrf.mxu1  ;;  %2030 = vmatprep.mubr.msk.f32.mxu1 %vm155_vm1, %v563_v9 }
 0x11a   :  { %v564_v18 = vmul.f32 %v534_v4, %v316_v12  ;;  %v337_v31 = vadd.f32 %v1988_v17, %v2484_v13 }
 0x11b   :  { %v328_v22 = vpop.f32.mrf.mxu1 }
 0x11c   :  { %v329_v23 = vadd.f32 %v2484_v13, %v328_v22  ;;  %2031 = vmatmul.mubr.msk.f32.gmra.mxu1 %vm155_vm1, %v564_v18  ;;  %v569_v39 = vmul.f32 %v546_v35, %v337_v31 }
 0x11d   :  { %v1989_v28 = vpop.f32.mrf.mxu1  ;;  %2033 = vmatprep.mubr.msk.f32.mxu1 %vm155_vm1, %v565_v21 }
 0x11e   :  { %v567_v30 = vmul.f32 %v542_v26, %v329_v23  ;;  %v340_v36 = vadd.f32 %v1989_v28, %v2484_v13 }
 0x11f   :  { %v331_v32 = vpop.f32.mrf.mxu1 }
 0x120   :  { %v332_v34 = vadd.f32 %v2484_v13, %v331_v32  ;;  %2034 = vmatmul.mubr.msk.f32.gmra.mxu1 %vm155_vm1, %v566_v29  ;;  %v570_v40 = vmul.f32 %v546_v35, %v340_v36  ;;  %v2107_v13 = vld [vmem:[%s2854_s5 + $0x10] sm:$0xff]  }
 0x121   :  { %2036 = vmatprep.mubr.msk.f32.mxu1 %vm155_vm1, %v567_v30  ;;  %1992 = vmatprep.subr.bf16.mxu0 %v2107_v13 }
 0x122   :  { %v568_v38 = vmul.f32 %v542_v26, %v332_v34  ;;  %1993 = vmatpush3.bf16.msra.mxu0 %v2107_v13 }
 0x123   :  { %2042 = vmatprep.subr.msk.mxu0 %vm1059_vm2, %v1010_v41 }
 0x124   :  { %2037 = vmatmul.mubr.msk.f32.gmra.mxu1 %vm155_vm1, %v568_v38 }
 0x125   :  { %2039 = vmatprep.mubr.msk.f32.mxu1 %vm155_vm1, %v569_v39  ;;  %1995 = vmatmul.mubr.msk.bf16.vlgmr.msra.gmra.mxu0 %vm155_vm1, %v2403_v19  ;;  %v2550_v19 = vadd.s32 8, %v2472_v63 }
 0x126   :  { %1998 = vmatprep.mubr.msk.bf16.mxu0 %vm155_vm1, %v2409_v24  ;;  %2043 = vmatpush3.msk.msra.mxu0 %vm1059_vm2, %v1010_v41 }
 0x127   :  { %2076 = vmatprep.subr.bf16.mxu0 %v2279_v0  ;;  %vm772_vm3 = vcmp.lt.s32.totalorder %v2550_v19, 10 }
 0x128   :  { %2040 = vmatmul.mubr.msk.f32.gmra.mxu1 %vm155_vm1, %v570_v40 }
 0x129   :  { %2072 = vmatprep.mubr.msk.bf16.mxu1 %vm2280_vm0, %v2279_v0 }
 0x12d   :  { %1999 = vmatmul.mubr.msk.bf16.gmra.mxu0 %vm155_vm1, %v2441_v46 }
 0x12e   :  { %2002 = vmatprep.mubr.msk.bf16.mxu0 %vm155_vm1, %v2444_v48 }
 0x135   :  { %2003 = vmatmul.mubr.msk.bf16.gmra.mxu0 %vm155_vm1, %v2456_v55 }
 0x136   :  { %2006 = vmatprep.mubr.msk.bf16.mxu0 %vm155_vm1, %v2458_v56 }
 0x13d   :  { %2007 = vmatmul.mubr.msk.bf16.gmra.mxu0 %vm155_vm1, %v2464_v57 }
 0x1cc   :  { %v2020_v24 = vpop.f32.mrf.mxu1 }
 0x1cd   :  { %v778_v46 = vsel %vm772_vm3, %v2020_v24, -1e+30 }
 0x1ce   :  { %v795_v48 = vsel %vm793_vm4, %v778_v46, -inf  ;;  %v689_v55 = vpop.f32.mrf.mxu1 }
 0x1cf   :  { %v794_v56 = vsel %vm793_vm4, %v689_v55, -inf }
 0x1d0   :  { %v796_v57 = vmax.f32 %v794_v56, %v795_v48  ;;  %v2023_v43 = vpop.f32.mrf.mxu1 }
 0x1d1   :  { %v780_v44 = vsel %vm772_vm3, %v2023_v43, -1e+30 }
 0x1d2   :  { %v797_v45 = vrot.slane %v796_v57, 4  ;;  %v804_v63 = vsel %vm793_vm4, %v780_v44, -inf  ;;  %v699_v47 = vpop.f32.mrf.mxu1 }
 0x1d3   :  { %v803_v50 = vsel %vm793_vm4, %v699_v47, -inf }
 0x1d4   :  { %v798_v51 = vmax.f32 %v796_v57, %v797_v45  ;;  %v805_v52 = vmax.f32 %v803_v50, %v804_v63  ;;  %v2026_v53 = vpop.f32.mrf.mxu1 }
 0x1d5   :  { %v2563_v58 = vsel %vm772_vm3, %v2026_v53, -1e+30 }
 0x1d6   :  { %v799_v59 = vrot.slane %v798_v51, 2  ;;  %v806_v60 = vrot.slane %v805_v52, 4  ;;  %v813_v61 = vsel %vm793_vm4, %v2563_v58, -inf  ;;  %v709_v62 = vpop.f32.mrf.mxu1 }
 0x1d7   :  { %v812_v1 = vsel %vm793_vm4, %v709_v62, -inf }
 0x1d8   :  { %v800_v3 = vmax.f32 %v798_v51, %v799_v59  ;;  %v807_v4 = vmax.f32 %v805_v52, %v806_v60  ;;  %v814_v5 = vmax.f32 %v812_v1, %v813_v61  ;;  %v2029_v6 = vpop.f32.mrf.mxu1 }
 0x1d9   :  { %v2570_v7 = vsel %vm772_vm3, %v2029_v6, -1e+30 }
 0x1da   :  { %v801_v9 = vrot.slane %v800_v3, 1  ;;  %v808_v10 = vrot.slane %v807_v4, 2  ;;  %v815_v11 = vrot.slane %v814_v5, 4  ;;  %v822_v12 = vsel %vm793_vm4, %v2570_v7, -inf  ;;  %v2574_v14 = vpop.f32.mrf.mxu1 }
 0x1db   :  { %v821_v16 = vsel %vm793_vm4, %v2574_v14, -inf }
 0x1dc   :  { %v802_v17 = vmax.f32 %v800_v3, %v801_v9  ;;  %v809_v2 = vmax.f32 %v807_v4, %v808_v10  ;;  %v816_v18 = vmax.f32 %v814_v5, %v815_v11  ;;  %v823_v21 = vmax.f32 %v821_v16, %v822_v12  ;;  %v2032_v22 = vpop.f32.mrf.mxu1 }
 0x1dd   :  { %v2580_v23 = vsel %vm772_vm3, %v2032_v22, -1e+30 }
 0x1de   :  { %v866_v26 = vsub.f32 %v689_v55, %v802_v17  ;;  %v867_v27 = vsub.f32 %v778_v46, %v802_v17  ;;  %v810_v28 = vrot.slane %v809_v2, 1  ;;  %v817_v29 = vrot.slane %v816_v18, 2  ;;  %v2582_v30 = vpop.f32.mrf.mxu1 }
 0x1df   :  { %v824_v31 = vrot.slane %v823_v21, 4  ;;  %v831_v32 = vsel %vm793_vm4, %v2580_v23, -inf  ;;  %v830_v34 = vsel %vm793_vm4, %v2582_v30, -inf }
 0x1e0   :  { %v882_v35 = vmul.f32 1.442695, %v866_v26  ;;  %v884_v36 = vmul.f32 1.442695, %v867_v27  ;;  %v811_v38 = vmax.f32 %v809_v2, %v810_v28  ;;  %v818_v39 = vmax.f32 %v816_v18, %v817_v29  ;;  %v2035_v40 = vpop.f32.mrf.mxu1 }
 0x1e1   :  { %v825_v8 = vmax.f32 %v823_v21, %v824_v31  ;;  %v832_v13 = vmax.f32 %v830_v34, %v831_v32  ;;  %v2590_v41 = vsel %vm772_vm3, %v2035_v40, -1e+30 }
 0x1e2   :  { %2113 = vpow2.f32 %v882_v35  ;;  %v868_v24 = vsub.f32 %v699_v47, %v811_v38  ;;  %v869_v46 = vsub.f32 %v780_v44, %v811_v38  ;;  %v819_v48 = vrot.slane %v818_v39, 1  ;;  %v2592_v55 = vpop.f32.mrf.mxu1 }
 0x1e3   :  { %2115 = vpow2.f32 %v884_v36  ;;  %v826_v56 = vrot.slane %v825_v8, 2  ;;  %v833_v57 = vrot.slane %v832_v13, 4  ;;  %v840_v43 = vsel %vm793_vm4, %v2590_v41, -inf }
 0x1e4   :  { %v886_v45 = vmul.f32 1.442695, %v868_v24  ;;  %v888_v63 = vmul.f32 1.442695, %v869_v46  ;;  %v820_v50 = vmax.f32 %v818_v39, %v819_v48  ;;  %v839_v51 = vsel %vm793_vm4, %v2592_v55, -inf  ;;  %v2038_v52 = vpop.f32.mrf.mxu1 }
 0x1e5   :  { %v827_v53 = vmax.f32 %v825_v8, %v826_v56  ;;  %v834_v59 = vmax.f32 %v832_v13, %v833_v57  ;;  %v841_v47 = vmax.f32 %v839_v51, %v840_v43  ;;  %v2600_v44 = vsel %vm772_vm3, %v2038_v52, -1e+30 }
 0x1e6   :  { %2117 = vpow2.f32 %v886_v45  ;;  %v870_v60 = vsub.f32 %v709_v62, %v820_v50  ;;  %v871_v61 = vsub.f32 %v2563_v58, %v820_v50  ;;  %v849_v1 = vsel %vm793_vm4, %v2600_v44, -inf  ;;  %v2605_v3 = vpop.f32.mrf.mxu1 }
 0x1e7   :  { %2119 = vpow2.f32 %v888_v63  ;;  %v828_v4 = vrot.slane %v827_v53, 1  ;;  %v835_v5 = vrot.slane %v834_v59, 2  ;;  %v842_v6 = vrot.slane %v841_v47, 4 }
 0x1e8   :  { %v890_v9 = vmul.f32 1.442695, %v870_v60  ;;  %v892_v10 = vmul.f32 1.442695, %v871_v61  ;;  %v848_v11 = vsel %vm793_vm4, %v2605_v3, -inf  ;;  %v2041_v12 = vpop.f32.mrf.mxu1 }
 0x1e9   :  { %v829_v16 = vmax.f32 %v827_v53, %v828_v4  ;;  %v836_v17 = vmax.f32 %v834_v59, %v835_v5  ;;  %v843_v62 = vmax.f32 %v841_v47, %v842_v6  ;;  %v850_v2 = vmax.f32 %v848_v11, %v849_v1 }
 0x1ea   :  { %2121 = vpow2.f32 %v890_v9  ;;  %v2611_v58 = vsel %vm772_vm3, %v2041_v12, -1e+30  ;;  %v2613_v18 = vpop.f32.mrf.mxu1 }
 0x1eb   :  { %2123 = vpow2.f32 %v892_v10  ;;  %v872_v21 = vsub.f32 %v2574_v14, %v829_v16  ;;  %v873_v22 = vsub.f32 %v2570_v7, %v829_v16  ;;  %v837_v26 = vrot.slane %v836_v17, 1 }
 0x1ec   :  { %v844_v27 = vrot.slane %v843_v62, 2  ;;  %v851_v28 = vrot.slane %v850_v2, 4  ;;  %v858_v29 = vsel %vm793_vm4, %v2611_v58, -inf  ;;  %v857_v31 = vsel %vm793_vm4, %v2613_v18, -inf }
 0x1ed   :  { %v894_v32 = vmul.f32 1.442695, %v872_v21  ;;  %v896_v19 = vmul.f32 1.442695, %v873_v22  ;;  %v838_v34 = vmax.f32 %v836_v17, %v837_v26  ;;  %v859_v35 = vmax.f32 %v857_v31, %v858_v29 }
 0x1ee   :  { %v845_v36 = vmax.f32 %v843_v62, %v844_v27  ;;  %v852_v38 = vmax.f32 %v850_v2, %v851_v28 }
 0x1ef   :  { %v2621_v39 = vpop.eup %2113  ;;  %2125 = vpow2.f32 %v894_v32  ;;  %v874_v7 = vsub.f32 %v2582_v30, %v838_v34  ;;  %v875_v14 = vsub.f32 %v2580_v23, %v838_v34  ;;  %v860_v40 = vrot.slane %v859_v35, 4 }
 0x1f0   :  { %v2625_v8 = vpop.eup %2115  ;;  %v914_v13 = vsel %vm793_vm4, %v2621_v39, 0.0  ;;  %2127 = vpow2.f32 %v896_v19  ;;  %v846_v24 = vrot.slane %v845_v36, 1  ;;  %v853_v46 = vrot.slane %v852_v38, 2 }
 0x1f1   :  { %v915_v48 = vsel %vm793_vm4, %v2625_v8, 0.0  ;;  %v898_v56 = vmul.f32 1.442695, %v874_v7  ;;  %v900_v57 = vmul.f32 1.442695, %v875_v14  ;;  %v861_v43 = vmax.f32 %v859_v35, %v860_v40 }
 0x1f2   :  { %v916_v45 = vadd.f32 %v915_v48, %v914_v13  ;;  %v847_v63 = vmax.f32 %v845_v36, %v846_v24  ;;  %v854_v30 = vmax.f32 %v852_v38, %v853_v46 }
 0x1f3   :  { %v2631_v50 = vpop.eup %2117  ;;  %2129 = vpow2.f32 %v898_v56  ;;  %v862_v23 = vrot.slane %v861_v43, 2 }
 0x1f4   :  { %v2633_v51 = vpop.eup %2119  ;;  %v917_v52 = vrot.slane %v916_v45, 4  ;;  %v923_v53 = vsel %vm793_vm4, %v2631_v50, 0.0  ;;  %2131 = vpow2.f32 %v900_v57  ;;  %v876_v59 = vsub.f32 %v2592_v55, %v847_v63 }
 0x1f5   :  { %v924_v47 = vsel %vm793_vm4, %v2633_v51, 0.0  ;;  %v877_v60 = vsub.f32 %v2590_v41, %v847_v63  ;;  %v855_v61 = vrot.slane %v854_v30, 1  ;;  %v863_v1 = vmax.f32 %v861_v43, %v862_v23 }
 0x1f6   :  { %v918_v4 = vadd.f32 %v917_v52, %v916_v45  ;;  %v925_v5 = vadd.f32 %v924_v47, %v923_v53  ;;  %v902_v6 = vmul.f32 1.442695, %v876_v59 }
 0x1f7   :  { %v2641_v9 = vpop.eup %2121  ;;  %v904_v10 = vmul.f32 1.442695, %v877_v60  ;;  %v856_v11 = vmax.f32 %v854_v30, %v855_v61  ;;  %v864_v12 = vrot.slane %v863_v1, 1 }
 0x1f8   :  { %v2643_v16 = vpop.eup %2123  ;;  %v919_v17 = vrot.slane %v918_v4, 2  ;;  %v926_v62 = vrot.slane %v925_v5, 4  ;;  %v932_v55 = vsel %vm793_vm4, %v2641_v9, 0.0  ;;  %2133 = vpow2.f32 %v902_v6 }
 0x1f9   :  { %v933_v41 = vsel %vm793_vm4, %v2643_v16, 0.0  ;;  %2135 = vpow2.f32 %v904_v10  ;;  %v878_v2 = vsub.f32 %v2605_v3, %v856_v11  ;;  %v879_v21 = vsub.f32 %v2600_v44, %v856_v11 }
 0x1fa   :  { %v920_v22 = vadd.f32 %v919_v17, %v918_v4  ;;  %v927_v26 = vadd.f32 %v926_v62, %v925_v5  ;;  %v934_v27 = vadd.f32 %v933_v41, %v932_v55  ;;  %v865_v28 = vmax.f32 %v863_v1, %v864_v12 }
 0x1fb   :  { %v906_v29 = vmul.f32 1.442695, %v878_v2  ;;  %v908_v31 = vmul.f32 1.442695, %v879_v21 }
 0x1fc   :  { %v2651_v32 = vpop.eup %2125  ;;  %v921_v19 = vrot.slane %v920_v22, 1  ;;  %v928_v34 = vrot.slane %v927_v26, 2  ;;  %v935_v35 = vrot.slane %v934_v27, 4  ;;  %v880_v36 = vsub.f32 %v2613_v18, %v865_v28 }
 0x1fd   :  { %v2654_v38 = vpop.eup %2127  ;;  %v941_v3 = vsel %vm793_vm4, %v2651_v32, 0.0  ;;  %2137 = vpow2.f32 %v906_v29  ;;  %v881_v44 = vsub.f32 %v2611_v58, %v865_v28 }
 0x1fe   :  { %v929_v7 = vadd.f32 %v928_v34, %v927_v26  ;;  %v936_v14 = vadd.f32 %v935_v35, %v934_v27  ;;  %v942_v40 = vsel %vm793_vm4, %v2654_v38, 0.0  ;;  %2139 = vpow2.f32 %v908_v31 }
 0x1ff   :  { %v943_v13 = vadd.f32 %v942_v40, %v941_v3  ;;  %v910_v24 = vmul.f32 1.442695, %v880_v36  ;;  %v912_v46 = vmul.f32 1.442695, %v881_v44  ;;  %v922_v48 = vadd.f32 %v921_v19, %v920_v22 }
 0x200   :  { %v2661_v56 = vpop.eup %2129  ;;  %v930_v18 = vrot.slane %v929_v7, 1  ;;  %v937_v57 = vrot.slane %v936_v14, 2 }
 0x201   :  { %v2663_v43 = vpop.eup %2131  ;;  %v944_v45 = vrot.slane %v943_v13, 4  ;;  %v950_v58 = vsel %vm793_vm4, %v2661_v56, 0.0  ;;  %2141 = vpow2.f32 %v910_v24 }
 0x202   :  { %v938_v63 = vadd.f32 %v937_v57, %v936_v14  ;;  %v951_v30 = vsel %vm793_vm4, %v2663_v43, 0.0  ;;  %2143 = vpow2.f32 %v912_v46  ;;  %v931_v23 = vadd.f32 %v930_v18, %v929_v7 }
 0x203   :  { %v945_v52 = vadd.f32 %v944_v45, %v943_v13  ;;  %v952_v53 = vadd.f32 %v951_v30, %v950_v58  ;;  %2145 = vrcp.f32 %v922_v48 }
 0x204   :  { %v939_v59 = vrot.slane %v938_v63, 1  ;;  %2147 = vrcp.f32 %v931_v23 }
 0x205   :  { %v2669_v47 = vpop.eup %2133  ;;  %v946_v60 = vrot.slane %v945_v52, 2  ;;  %v953_v61 = vrot.slane %v952_v53, 4 }
 0x206   :  { %v2671_v1 = vpop.eup %2135  ;;  %v959_v4 = vsel %vm793_vm4, %v2669_v47, 0.0  ;;  %v940_v5 = vadd.f32 %v939_v59, %v938_v63 }
 0x207   :  { %v947_v6 = vadd.f32 %v946_v60, %v945_v52  ;;  %v954_v10 = vadd.f32 %v953_v61, %v952_v53  ;;  %v960_v11 = vsel %vm793_vm4, %v2671_v1, 0.0 }
 0x208   :  { %v961_v12 = vadd.f32 %v960_v11, %v959_v4  ;;  %2149 = vrcp.f32 %v940_v5 }
 0x209   :  { %v948_v17 = vrot.slane %v947_v6, 1  ;;  %v955_v62 = vrot.slane %v954_v10, 2 }
 0x20a   :  { %v2677_v55 = vpop.eup %2137  ;;  %v962_v41 = vrot.slane %v961_v12, 4 }
 0x20b   :  { %v2679_v2 = vpop.eup %2139  ;;  %v956_v21 = vadd.f32 %v955_v62, %v954_v10  ;;  %v968_v22 = vsel %vm793_vm4, %v2677_v55, 0.0  ;;  %v949_v26 = vadd.f32 %v948_v17, %v947_v6 }
 0x20c   :  { %v963_v27 = vadd.f32 %v962_v41, %v961_v12  ;;  %v969_v28 = vsel %vm793_vm4, %v2679_v2, 0.0 }
 0x20d   :  { %v957_v29 = vrot.slane %v956_v21, 1  ;;  %v970_v31 = vadd.f32 %v969_v28, %v968_v22  ;;  %2151 = vrcp.f32 %v949_v26  ;;  %v1996_v26 = vpop.f32.mrf.mxu0 }
 0x20e   :  { %v2142_v19 = vpop.eup %2141  ;;  %v964_v34 = vrot.slane %v963_v27, 2 }
 0x20f   :  { %v2144_v35 = vpop.eup %2143  ;;  %v971_v36 = vrot.slane %v970_v31, 4  ;;  %v977_v3 = vsel %vm793_vm4, %v2142_v19, 0.0  ;;  %v958_v44 = vadd.f32 %v957_v29, %v956_v21 }
 0x210   :  { %v2146_v7 = vpop.eup %2145  ;;  %v965_v14 = vadd.f32 %v964_v34, %v963_v27  ;;  %v978_v40 = vsel %vm793_vm4, %v2144_v35, 0.0  ;;  %v402_v27 = vpop.f32.mrf.mxu0 }
 0x211   :  { %v2148_v13 = vpop.eup %2147  ;;  %v972_v24 = vadd.f32 %v971_v36, %v970_v31  ;;  %v979_v46 = vadd.f32 %v978_v40, %v977_v3  ;;  %v994_v48 = vmul.f32 %v2146_v7, %v2621_v39  ;;  %v995_v18 = vmul.f32 %v2146_v7, %v2625_v8 }
 0x212   :  { %v966_v57 = vrot.slane %v965_v14, 1  ;;  %v996_v45 = vmul.f32 %v2148_v13, %v2631_v50  ;;  %2153 = vrcp.f32 %v958_v44  ;;  %v997_v30 = vmul.f32 %v2148_v13, %v2633_v51  ;;  %v1997_v28 = vpop.f32.mrf.mxu0 }
 0x213   :  { %v973_v58 = vrot.slane %v972_v24, 2  ;;  %v980_v63 = vrot.slane %v979_v46, 4  ;;  %2044 = vmatprep.mubr.msk.f32.mxu0 %vm793_vm4, %v994_v48 }
 0x214   :  { %2045 = vmatmul.mubr.msk.f32.vlgmr.msra.gmra.mxu0 %vm793_vm4, %v995_v18  ;;  %v967_v23 = vadd.f32 %v966_v57, %v965_v14  ;;  %v405_v29 = vpop.f32.mrf.mxu0 }
 0x215   :  { %v2150_v52 = vpop.eup %2149  ;;  %v974_v53 = vadd.f32 %v973_v58, %v972_v24  ;;  %v981_v59 = vadd.f32 %v980_v63, %v979_v46  ;;  %2047 = vmatprep.mubr.msk.f32.mxu0 %vm793_vm4, %v996_v45  ;;  %v2743_v46 = vld [vmem:[%s2859_s10 + $0x1] ss:$0 sm:$0xff] }
 0x216   :  { %v998_v39 = vmul.f32 %v2150_v52, %v2641_v9  ;;  %2155 = vrcp.f32 %v967_v23  ;;  %v999_v60 = vmul.f32 %v2150_v52, %v2643_v16  ;;  %v2000_v31 = vpop.f32.mrf.mxu0  ;;  %v403_v18 = vadd.f32 %v2743_v46, %v402_v27 }
 0x217   :  { %v975_v8 = vrot.slane %v974_v53, 1  ;;  %v982_v50 = vrot.slane %v981_v59, 2  ;;  %v414_v45 = vadd.f32 %v1997_v28, %v2743_v46  ;;  %v406_v58 = vadd.f32 %v2743_v46, %v405_v29 }
 0x218   :  { %2048 = vmatmul.mubr.msk.f32.gmra.mxu0 %vm793_vm4, %v997_v30  ;;  %v411_v23 = vadd.f32 %v1996_v26, %v2743_v46 }
 0x219   :  { %v983_v61 = vadd.f32 %v982_v50, %v981_v59  ;;  %2050 = vmatprep.mubr.msk.f32.mxu0 %vm793_vm4, %v998_v39  ;;  %v976_v4 = vadd.f32 %v975_v8, %v974_v53 }
 0x21a   :  { %v2152_v51 = vpop.eup %2151 }
 0x21b   :  { %v984_v5 = vrot.slane %v983_v61, 1  ;;  %v1000_v6 = vmul.f32 %v2152_v51, %v2651_v32  ;;  %2157 = vrcp.f32 %v976_v4  ;;  %v1001_v9 = vmul.f32 %v2152_v51, %v2654_v38 }
 0x21c   :  { %2051 = vmatmul.mubr.msk.f32.gmra.mxu0 %vm793_vm4, %v999_v60 }
 0x21d   :  { %2053 = vmatprep.mubr.msk.f32.mxu0 %vm793_vm4, %v1000_v6  ;;  %v985_v10 = vadd.f32 %v984_v5, %v983_v61 }
 0x21f   :  { %v2154_v11 = vpop.eup %2153  ;;  %2159 = vrcp.f32 %v985_v10 }
 0x220   :  { %2054 = vmatmul.mubr.msk.f32.gmra.mxu0 %vm793_vm4, %v1001_v9  ;;  %v1002_v16 = vmul.f32 %v2154_v11, %v2661_v56  ;;  %v1003_v12 = vmul.f32 %v2154_v11, %v2663_v43 }
 0x222   :  { %2056 = vmatprep.mubr.msk.f32.mxu0 %vm793_vm4, %v1002_v16 }
 0x223   :  { %v2156_v17 = vpop.eup %2155 }
 0x224   :  { %2057 = vmatmul.mubr.msk.f32.gmra.mxu0 %vm793_vm4, %v1003_v12  ;;  %v1004_v32 = vmul.f32 %v2156_v17, %v2669_v47  ;;  %v1005_v38 = vmul.f32 %v2156_v17, %v2671_v1  ;;  %v2108_v47 = vld [vmem:[%s2855_s6 + $0x8] sm:$0xff]   ;;  %v2109_v1 = vld [vmem:[%s2855_s6] sm:$0xff]  }
 0x225   :  { %2069 = vmatpush3.bf16.msra.mxu1 %v2108_v47 }
 0x226   :  { %2059 = vmatprep.mubr.msk.f32.mxu0 %vm793_vm4, %v1004_v32  ;;  %2070 = vmatprep.subr.bf16.mxu1 %v2279_v0  ;;  %v427_v32 = vadd.f32 %v2000_v31, %v2743_v46 }
 0x228   :  { %v2158_v62 = vpop.eup %2157  ;;  %2060 = vmatmul.mubr.msk.f32.gmra.mxu0 %vm793_vm4, %v1005_v38 }
 0x229   :  { %v1006_v41 = vmul.f32 %v2158_v62, %v2677_v55  ;;  %v1007_v56 = vmul.f32 %v2158_v62, %v2679_v2  ;;  %2071 = vmatpush3.bf16.msra.mxu1 %v2109_v1  ;;  %v2110_v55 = vld [vmem:[%s2856_s7 + $0x8] sm:$0xff]   ;;  %v2111_v2 = vld [vmem:[%s2856_s7] sm:$0xff]  }
 0x22a   :  { %2084 = vmatprep.subr.bf16.mxu1 %v2279_v0  ;;  %2077 = vmatpush3.bf16.msra.mxu0 %v2110_v55 }
 0x22b   :  { %2062 = vmatprep.mubr.msk.f32.mxu0 %vm793_vm4, %v1006_v41  ;;  %2078 = vmatprep.subr.bf16.mxu0 %v2279_v0 }
 0x22c   :  { %v2160_v43 = vpop.eup %2159  ;;  %2063 = vmatmul.mubr.msk.f32.gmra.mxu0 %vm793_vm4, %v1007_v56 }
 0x22d   :  { %v1008_v21 = vmul.f32 %v2160_v43, %v2142_v19  ;;  %v1009_v22 = vmul.f32 %v2160_v43, %v2144_v35  ;;  %v418_v19 = vpop.f32.mrf.mxu0 }
 0x22e   :  { %2079 = vmatpush3.bf16.msra.mxu0 %v2111_v2  ;;  %v419_v61 = vadd.f32 %v2743_v46, %v418_v19 }
 0x22f   :  { %2065 = vmatprep.mubr.msk.f32.mxu0 %vm793_vm4, %v1008_v21  ;;  %v2001_v34 = vpop.f32.mrf.mxu0 }
 0x230   :  { %2066 = vmatmul.mubr.msk.f32.gmra.mxu0 %vm793_vm4, %v1009_v22  ;;  %v430_v11 = vadd.f32 %v2001_v34, %v2743_v46 }
 0x231   :  { %2080 = vmatprep.mubr.msk.bf16.mxu0 %vm2280_vm0, %v2279_v0  ;;  %v421_v35 = vpop.f32.mrf.mxu0 }
 0x232   :  { %v422_v39 = vadd.f32 %v2743_v46, %v421_v35 }
 0x233   :  { %v2004_v36 = vpop.f32.mrf.mxu0 }
 0x235   :  { %v434_v3 = vpop.f32.mrf.mxu0 }
 0x236   :  { %v435_v26 = vadd.f32 %v2743_v46, %v434_v3 }
 0x237   :  { %v2005_v44 = vpop.f32.mrf.mxu0 }
 0x238   :  { %v446_v35 = vadd.f32 %v2005_v44, %v2743_v46 }
 0x239   :  { %v437_v7 = vpop.f32.mrf.mxu0 }
 0x23a   :  { %v438_v1 = vadd.f32 %v2743_v46, %v437_v7  ;;  %v443_v7 = vadd.f32 %v2004_v36, %v2743_v46 }
 0x23b   :  { %v2734_v14 = vpop.f32.mrf.mxu0 }
 0x23d   :  { %v2736_v40 = vpop.f32.mrf.mxu0 }
 0x23f   :  { %v2738_v13 = vpop.f32.mrf.mxu0 }
 0x241   :  { %v453_v24 = vpop.f32.mrf.mxu0 }
 0x2d4   :  { %v2046_v48 = vpop.f32.mrf.mxu0 }
 0x2d5   :  { %v1209_v53 = vmul.f32 %v2046_v48, %v406_v58 }
 0x2d6   :  { %v1129_v57 = vpop.f32.mrf.mxu0 }
 0x2d7   :  { %v1208_v63 = vmul.f32 %v1129_v57, %v403_v18  ;;  %v1225_v6 = vsel %vm155_vm1, %v1209_v53, 0.0 }
 0x2d8   :  { %v2049_v30 = vpop.f32.mrf.mxu0 }
 0x2d9   :  { %v1211_v52 = vmul.f32 %v2049_v30, %v414_v45  ;;  %v1224_v50 = vsel %vm155_vm1, %v1208_v63, 0.0  ;;  %v454_v30 = vadd.f32 %v2743_v46, %v453_v24 }
 0x2da   :  { %v1139_v59 = vpop.f32.mrf.mxu0  ;;  %v1226_v16 = vadd.f32 %v1225_v6, %v1224_v50  ;;  %v462_v6 = vadd.f32 %v2738_v13, %v2743_v46 }
 0x2db   :  { %v1210_v8 = vmul.f32 %v1139_v59, %v411_v23  ;;  %v1234_v4 = vsel %vm155_vm1, %v1211_v52, 0.0 }
 0x2dc   :  { %v2052_v60 = vpop.f32.mrf.mxu0  ;;  %v1227_v22 = vrot.slane %v1226_v16, 4 }
 0x2dd   :  { %v1233_v51 = vsel %vm155_vm1, %v1210_v8, 0.0  ;;  %v1213_v5 = vmul.f32 %v2052_v60, %v422_v39  ;;  %v451_v60 = vadd.f32 %v2743_v46, %v2736_v40  ;;  %v459_v40 = vadd.f32 %v2734_v14, %v2743_v46 }
 0x2de   :  { %v1235_v9 = vadd.f32 %v1234_v4, %v1233_v51  ;;  %v1149_v10 = vpop.f32.mrf.mxu0  ;;  %v1228_v48 = vadd.f32 %v1227_v22, %v1226_v16 }
 0x2df   :  { %v1212_v12 = vmul.f32 %v1149_v10, %v419_v61  ;;  %v1243_v38 = vsel %vm155_vm1, %v1213_v5, 0.0 }
 0x2e0   :  { %v2055_v17 = vpop.f32.mrf.mxu0  ;;  %v1236_v56 = vrot.slane %v1235_v9, 4  ;;  %v1229_v39 = vrot.slane %v1228_v48, 2 }
 0x2e1   :  { %v1242_v62 = vsel %vm155_vm1, %v1212_v12, 0.0  ;;  %v1215_v41 = vmul.f32 %v2055_v17, %v430_v11 }
 0x2e2   :  { %v1244_v43 = vadd.f32 %v1243_v38, %v1242_v62  ;;  %v1159_v21 = vpop.f32.mrf.mxu0  ;;  %v1237_v29 = vadd.f32 %v1236_v56, %v1235_v9  ;;  %v1230_v16 = vadd.f32 %v1229_v39, %v1228_v48 }
 0x2e3   :  { %v1214_v47 = vmul.f32 %v1159_v21, %v427_v32  ;;  %v1252_v27 = vsel %vm155_vm1, %v1215_v41, 0.0 }
 0x2e4   :  { %v1245_v55 = vrot.slane %v1244_v43, 4  ;;  %v2058_v2 = vpop.f32.mrf.mxu0  ;;  %v1238_v23 = vrot.slane %v1237_v29, 2 }
 0x2e5   :  { %v1251_v28 = vsel %vm155_vm1, %v1214_v47, 0.0  ;;  %v1217_v19 = vmul.f32 %v2058_v2, %v438_v1  ;;  %v1231_v2 = vrot.slane %v1230_v16, 1 }
 0x2e6   :  { %v1253_v31 = vadd.f32 %v1252_v27, %v1251_v28  ;;  %v1169_v34 = vpop.f32.mrf.mxu0  ;;  %v1246_v18 = vadd.f32 %v1245_v55, %v1244_v43  ;;  %v1239_v9 = vadd.f32 %v1238_v23, %v1237_v29 }
 0x2e7   :  { %v1216_v57 = vmul.f32 %v1169_v34, %v435_v26  ;;  %v1261_v53 = vsel %vm155_vm1, %v1217_v19, 0.0 }
 0x2e8   :  { %v1254_v45 = vrot.slane %v1253_v31, 4  ;;  %v2061_v58 = vpop.f32.mrf.mxu0  ;;  %v1247_v8 = vrot.slane %v1246_v18, 2  ;;  %v1240_v13 = vrot.slane %v1239_v9, 1 }
 0x2e9   :  { %v1260_v63 = vsel %vm155_vm1, %v1216_v57, 0.0  ;;  %v1219_v3 = vmul.f32 %v2061_v58, %v446_v35 }
 0x2ea   :  { %v1255_v52 = vadd.f32 %v1254_v45, %v1253_v31  ;;  %v1179_v59 = vpop.f32.mrf.mxu0  ;;  %v1262_v44 = vadd.f32 %v1261_v53, %v1260_v63  ;;  %v1248_v12 = vadd.f32 %v1247_v8, %v1246_v18  ;;  %v1241_v35 = vadd.f32 %v1240_v13, %v1239_v9 }
 0x2eb   :  { %v1218_v50 = vmul.f32 %v1179_v59, %v443_v7  ;;  %v1270_v51 = vsel %vm155_vm1, %v1219_v3, 0.0  ;;  %v1232_v45 = vadd.f32 %v1231_v2, %v1230_v16  ;;  %v1881_v2 = vld [vmem:[%s2860_s11] ss:$0 sm:$0xff] }
 0x2ec   :  { %v1256_v61 = vrot.slane %v1255_v52, 2  ;;  %v2064_v4 = vpop.f32.mrf.mxu0  ;;  %v1263_v36 = vrot.slane %v1262_v44, 4  ;;  %v1249_v26 = vrot.slane %v1248_v12, 1 }
 0x2ed   :  { %v1269_v5 = vsel %vm155_vm1, %v1218_v50, 0.0  ;;  %v1221_v24 = vmul.f32 %v2064_v4, %v454_v30 }
 0x2ee   :  { %v1271_v10 = vadd.f32 %v1270_v51, %v1269_v5  ;;  %v1189_v11 = vpop.f32.mrf.mxu0  ;;  %v1264_v17 = vadd.f32 %v1263_v36, %v1262_v44  ;;  %v1257_v38 = vadd.f32 %v1256_v61, %v1255_v52  ;;  %v1250_v58 = vadd.f32 %v1249_v26, %v1248_v12 }
 0x2ef   :  { %v1220_v32 = vmul.f32 %v1189_v11, %v451_v60  ;;  %v1279_v43 = vsel %vm155_vm1, %v1221_v24, 0.0  ;;  %v1297_v52 = vpack.c.bf16 %v1241_v35, %v1241_v35  ;;  %v1296_v44 = vpack.c.bf16 %v1232_v45, %v1232_v45 }
 0x2f0   :  { %v1272_v62 = vrot.slane %v1271_v10, 4  ;;  %v2067_v41 = vpop.f32.mrf.mxu0  ;;  %v1265_v56 = vrot.slane %v1264_v17, 2  ;;  %v1258_v29 = vrot.slane %v1257_v38, 1  ;;  %v1298_v8 = vpack.c.bf16 %v1250_v58, %v1250_v58 }
 0x2f1   :  { %v1278_v21 = vsel %vm155_vm1, %v1220_v32, 0.0  ;;  %v1223_v22 = vmul.f32 %v2067_v41, %v462_v6  ;;  %v1324_v36 = vunpack.c.l.b16 %v1297_v52  ;;  %v1323_v9 = vunpack.c.l.b16 %v1296_v44 }
 0x2f2   :  { %v1273_v47 = vadd.f32 %v1272_v62, %v1271_v10  ;;  %v1280_v1 = vadd.f32 %v1279_v43, %v1278_v21  ;;  %v1199_v55 = vpop.f32.mrf.mxu0  ;;  %v1266_v27 = vadd.f32 %v1265_v56, %v1264_v17  ;;  %v1259_v7 = vadd.f32 %v1258_v29, %v1257_v38 }
 0x2f3   :  { %v1222_v28 = vmul.f32 %v1199_v55, %v459_v40  ;;  %v1288_v19 = vsel %vm155_vm1, %v1223_v22, 0.0  ;;  %v1325_v6 = vunpack.c.l.b16 %v1298_v8  ;;  %v1332_v17 = vsel %vm1331_vm5, %v1324_v36, %v1323_v9  ;;  %v2112_v55 = vld [vmem:[#allocation8] sm:$0xff]  }
 0x2f4   :  { %v1274_v31 = vrot.slane %v1273_v47, 2  ;;  %v1281_v14 = vrot.slane %v1280_v1, 4  ;;  %v1267_v46 = vrot.slane %v1266_v27, 1  ;;  %v1299_v50 = vpack.c.bf16 %v1259_v7, %v1259_v7 }
 0x2f5   :  { %v1287_v34 = vsel %vm155_vm1, %v1222_v28, 0.0  ;;  %v1334_v38 = vsel %vm1333_vm6, %v1325_v6, %v1332_v17  ;;  %v1541_v45 = vrot.slane %v2405_v20, 4  ;;  %v1550_v58 = vrot.slane %v2411_v25, 4 }
 0x2f6   :  { %v1275_v48 = vadd.f32 %v1274_v31, %v1273_v47  ;;  %v1282_v18 = vadd.f32 %v1281_v14, %v1280_v1  ;;  %v1289_v57 = vadd.f32 %v1288_v19, %v1287_v34  ;;  %v1268_v23 = vadd.f32 %v1267_v46, %v1266_v27  ;;  %v1885_v46 = vld [vmem:[%s2861_s12] ss:$0 sm:$0xff] }
 0x2f7   :  { %v1326_v10 = vunpack.c.l.b16 %v1299_v50  ;;  %v1559_v7 = vrot.slane %v2420_v33, 4  ;;  %v1595_v52 = vrot.slane %v2454_v54, 4 }
 0x2f8   :  { %v1276_v63 = vrot.slane %v1275_v48, 1  ;;  %v1283_v3 = vrot.slane %v1282_v18, 2  ;;  %v1290_v30 = vrot.slane %v1289_v57, 4  ;;  %v1300_v4 = vpack.c.bf16 %v1268_v23, %v1268_v23 }
 0x2f9   :  { %v1336_v41 = vsel %vm1335_vm7, %v1326_v10, %v1334_v38  ;;  %v1586_v23 = vrot.slane %v2446_v49, 4 }
 0x2fa   :  { %v1277_v53 = vadd.f32 %v1276_v63, %v1275_v48  ;;  %v1284_v59 = vadd.f32 %v1283_v3, %v1282_v18  ;;  %v1291_v39 = vadd.f32 %v1290_v30, %v1289_v57  ;;  %v1327_v12 = vunpack.c.l.b16 %v1300_v4 }
 0x2fb   :  { %v1532_v63 = vrot.slane %v2398_v15, 4  ;;  %v1568_v3 = vrot.slane %v2429_v37, 4  ;;  %v1577_v30 = vrot.slane %v2438_v42, 4 }
 0x2fc   :  { %v1285_v60 = vrot.slane %v1284_v59, 1  ;;  %v1292_v61 = vrot.slane %v1291_v39, 2  ;;  %v1301_v51 = vpack.c.bf16 %v1277_v53, %v1277_v53  ;;  %v1338_v43 = vsel %vm1337_vm8, %v1327_v12, %v1336_v41 }
 0x2fd   :  { %v1542_v53 = vadd.f32 %v1541_v45, %v2405_v20  ;;  %v1533_v8 = vadd.f32 %v1532_v63, %v2398_v15  ;;  %v1569_v44 = vadd.f32 %v1568_v3, %v2429_v37  ;;  %v1578_v50 = vadd.f32 %v1577_v30, %v2438_v42 }
 0x2fe   :  { %v1286_v5 = vadd.f32 %v1285_v60, %v1284_v59  ;;  %v1293_v24 = vadd.f32 %v1292_v61, %v1291_v39  ;;  %v1328_v32 = vunpack.c.l.b16 %v1301_v51  ;;  %v1551_v59 = vadd.f32 %v1550_v58, %v2411_v25 }
 0x2ff   :  { %v1560_v39 = vadd.f32 %v1559_v7, %v2420_v33  ;;  %v1587_v60 = vadd.f32 %v1586_v23, %v2446_v49  ;;  %v1596_v61 = vadd.f32 %v1595_v52, %v2454_v54  ;;  %v1543_v4 = vrot.slane %v1542_v53, 2 }
 0x300   :  { %v1302_v11 = vpack.c.bf16 %v1286_v5, %v1286_v5  ;;  %v1294_v16 = vrot.slane %v1293_v24, 1  ;;  %v1340_v21 = vsel %vm1339_vm9, %v1328_v32, %v1338_v43  ;;  %v1552_v36 = vrot.slane %v1551_v59, 2 }
 0x301   :  { %v1561_v51 = vrot.slane %v1560_v39, 2  ;;  %v1534_v5 = vrot.slane %v1533_v8, 2  ;;  %v1579_v20 = vrot.slane %v1578_v50, 2  ;;  %v1588_v6 = vrot.slane %v1587_v60, 2 }
 0x302   :  { %v1295_v40 = vadd.f32 %v1294_v16, %v1293_v24  ;;  %v1329_v62 = vunpack.c.l.b16 %v1302_v11  ;;  %v1570_v24 = vrot.slane %v1569_v44, 2  ;;  %v1597_v25 = vrot.slane %v1596_v61, 2 }
 0x303   :  { %v1544_v9 = vadd.f32 %v1543_v4, %v1542_v53  ;;  %v1553_v33 = vadd.f32 %v1552_v36, %v1551_v59  ;;  %v1562_v10 = vadd.f32 %v1561_v51, %v1560_v39  ;;  %v1535_v15 = vadd.f32 %v1534_v5, %v1533_v8 }
 0x304   :  { %v1303_v56 = vpack.c.bf16 %v1295_v40, %v1295_v40  ;;  %v1342_v13 = vsel %vm1341_vm10, %v1329_v62, %v1340_v21  ;;  %v1571_v11 = vadd.f32 %v1570_v24, %v1569_v44  ;;  %v1580_v37 = vadd.f32 %v1579_v20, %v1578_v50 }
 0x305   :  { %v1589_v16 = vadd.f32 %v1588_v6, %v1587_v60  ;;  %v1598_v42 = vadd.f32 %v1597_v25, %v1596_v61  ;;  %v1545_v12 = vrot.slane %v1544_v9, 1  ;;  %v1554_v49 = vrot.slane %v1553_v33, 1 }
 0x306   :  { %v1330_v22 = vunpack.c.l.b16 %v1303_v56  ;;  %v1563_v17 = vrot.slane %v1562_v10, 1  ;;  %v1536_v54 = vrot.slane %v1535_v15, 1  ;;  %v1572_v32 = vrot.slane %v1571_v11, 1 }
 0x307   :  { %v1581_v40 = vrot.slane %v1580_v37, 1  ;;  %v1590_v38 = vrot.slane %v1589_v16, 1  ;;  %v1599_v62 = vrot.slane %v1598_v42, 1  ;;  %v1546_v41 = vadd.f32 %v1545_v12, %v1544_v9 }
 0x308   :  { %v1344_v47 = vsel %vm1343_vm11, %v1330_v22, %v1342_v13  ;;  %v1555_v56 = vadd.f32 %v1554_v49, %v1553_v33  ;;  %v1564_v43 = vadd.f32 %v1563_v17, %v1562_v10  ;;  %v1537_v21 = vadd.f32 %v1536_v54, %v1535_v15  ;;  %v1889_v22 = vld [vmem:[%s2862_s13] ss:$0 sm:$0xff] }
 0x309   :  { %v1345_v1 = vpack.c.b16 %v1344_v47, %v1344_v47  ;;  %v1573_v13 = vadd.f32 %v1572_v32, %v1571_v11  ;;  %v1582_v47 = vadd.f32 %v1581_v40, %v1580_v37 }
 0x30b   :  { %2073 = vmatmul.mubr.msk.bf16.vlgmr.msra.gmra.mxu1 %vm155_vm1, %v1345_v1 }
 0x30c   :  { %2086 = vmatprep.mubr.msk.bf16.mxu1 %vm2280_vm0, %v2279_v0  ;;  %2085 = vmatpush3.bf16.msra.mxu1 %v2112_v55  ;;  %v1591_v55 = vadd.f32 %v1590_v38, %v1589_v16 }
 0x3cb   :  { %v1395_v26 = vpop.f32.mrf.mxu1 }
 0x3cc   :  { %v1396_v27 = vadd.f32 %v1881_v2, %v1395_v26  ;;  %v1600_v2 = vadd.f32 %v1599_v62, %v1598_v42  ;;  %v1602_v26 = vmul.f32 0.1, %v1546_v41 }
 0x3cd   :  { %v2074_v28 = vpop.f32.mrf.mxu1 }
 0x3ce   :  { %v1401_v29 = vpack.c.bf16 %v1396_v27, %v1396_v27  ;;  %v1603_v27 = vmul.f32 0.1, %v1555_v56  ;;  %v1604_v28 = vmul.f32 0.1, %v1564_v43  ;;  %v1608_v45 = vmul.f32 0.1, %v1600_v2 }
 0x3cf   :  { %v1398_v31 = vpop.f32.mrf.mxu1 }
 0x3d0   :  { %2081 = vmatmul.mubr.msk.bf16.vlgmr.msra.gmra.mxu0 %vm155_vm1, %v1401_v29  ;;  %v1601_v31 = vmul.f32 0.1, %v1537_v21 }
 0x3d1   :  { %v2075_v14 = vpop.f32.mrf.mxu1 }
 0x490   :  { %v1462_v19 = vpop.f32.mrf.mxu0 }
 0x491   :  { %v1463_v0 = vadd.f32 %v1885_v46, %v1462_v19  ;;  %v1605_v46 = vmul.f32 0.1, %v1573_v13  ;;  %v1606_v19 = vmul.f32 0.1, %v1582_v47 }
 0x492   :  { %v2082_v34 = vpop.f32.mrf.mxu0 }
 0x493   :  { %v1468_v35 = vmax.f32 %v1463_v0, 0.0 }
 0x494   :  { %v1465_v48 = vpop.f32.mrf.mxu0 }
 0x495   :  { %v1469_v18 = vpack.c.bf16 %v1468_v35, %v1468_v35 }
 0x496   :  { %v2083_v57 = vpop.f32.mrf.mxu0 }
 0x497   :  { %2087 = vmatmul.mubr.msk.bf16.vlgmr.msra.gmra.mxu1 %vm1485_vm12, %v1469_v18  ;;  %v1607_v57 = vmul.f32 0.1, %v1591_v55 }
 0x557   :  { %v1523_v1 = vpop.f32.mrf.mxu1 }
 0x558   :  { %v1524_v29 = vadd.f32 %v1889_v22, %v1523_v1 }
 0x559   :  { %v2088_v14 = vpop.f32.mrf.mxu1 }
 0x55a   :  { %v1610_v0 = vrot.slane %v1524_v29, 1  ;;  %v1611_v34 = vrot.slane %v1524_v29, 2  ;;  %v1612_v35 = vrot.slane %v1524_v29, 3  ;;  %v1613_v48 = vrot.slane %v1524_v29, 4 }
 0x55b   :  { %v1526_v18 = vpop.f32.mrf.mxu1  ;;  %v1614_v58 = vrot.slane %v1524_v29, 5  ;;  %v1615_v7 = vrot.slane %v1524_v29, 6  ;;  %v1616_v63 = vrot.slane %v1524_v29, 7  ;;  %v1625_v59 = vadd.f32 %v1601_v31, %v1524_v29 }
 0x55c   :  { %v1626_v3 = vadd.f32 %v1610_v0, %v1602_v26  ;;  %v1627_v30 = vadd.f32 %v1611_v34, %v1603_v27  ;;  %v1628_v23 = vadd.f32 %v1612_v35, %v1604_v28  ;;  %v1629_v53 = vadd.f32 %v1613_v48, %v1605_v46 }
 0x55d   :  { %v2089_v52 = vpop.f32.mrf.mxu1  ;;  %v1630_v39 = vadd.f32 %v1614_v58, %v1606_v19  ;;  %v1631_v50 = vadd.f32 %v1615_v7, %v1607_v57  ;;  %v1632_v60 = vadd.f32 %v1616_v63, %v1608_v45 }
 0x55e   :  { %v1641_v8 = vrot.slane %v1626_v3, 7  ;;  %v1643_v44 = vrot.slane %v1627_v30, 6  ;;  %v1645_v4 = vrot.slane %v1628_v23, 5  ;;  %v1647_v51 = vrot.slane %v1629_v53, 4 }
 0x55f   :  { %v1649_v24 = vrot.slane %v1630_v39, 3  ;;  %v1651_v6 = vrot.slane %v1631_v50, 2  ;;  %v1653_v9 = vrot.slane %v1632_v60, 1 }
 0x560   :  { %v1642_v61 = vsel %vm1331_vm5, %v1641_v8, %v1625_v59 }
 0x561   :  { %v1644_v36 = vsel %vm1333_vm6, %v1643_v44, %v1642_v61  ;;  %v1892_v44 = vld [vmem:[%s2863_s14] ss:$0 sm:$0xff] }
 0x562   :  { %v1646_v5 = vsel %vm1335_vm7, %v1645_v4, %v1644_v36 }
 0x563   :  { %v1648_v20 = vsel %vm1337_vm8, %v1647_v51, %v1646_v5 }
 0x564   :  { %v1650_v25 = vsel %vm1339_vm9, %v1649_v24, %v1648_v20 }
 0x565   :  { %v1652_v33 = vsel %vm1341_vm10, %v1651_v6, %v1650_v25 }
 0x566   :  { %v1654_v10 = vsel %vm1343_vm11, %v1653_v9, %v1652_v33 }
 0x567   :  { %v1656_v15 = vsel %vm155_vm1, %v1654_v10, 0.0 }
 0x568   :  { %1657 = vadd.xlane.f32.xlu0 %v1656_v15 }
 0x5f1   :  { %v1658_v11 = vpop.xlane.xlu0 %1657 }
 0x5f2   :  { %v1660_v37 = vmul.f32 0.03125, %v1658_v11 }
 0x5f4   :  { %v1662_v16 = vrot.slane %v1660_v37, 1  ;;  %v1663_v42 = vrot.slane %v1660_v37, 2  ;;  %v1664_v12 = vrot.slane %v1660_v37, 3  ;;  %v1665_v49 = vrot.slane %v1660_v37, 4 }
 0x5f5   :  { %v1666_v17 = vrot.slane %v1660_v37, 5  ;;  %v1667_v54 = vrot.slane %v1660_v37, 6  ;;  %v1668_v32 = vrot.slane %v1660_v37, 7  ;;  %v1677_v40 = vsub.f32 %v1625_v59, %v1660_v37 }
 0x5f6   :  { %v1678_v38 = vsub.f32 %v1626_v3, %v1662_v16  ;;  %v1679_v62 = vsub.f32 %v1627_v30, %v1663_v42  ;;  %v1680_v41 = vsub.f32 %v1628_v23, %v1664_v12  ;;  %v1681_v56 = vsub.f32 %v1629_v53, %v1665_v49  ;;  %v1893_v42 = vld [vmem:[%s2864_s15] ss:$0 sm:$0xff]  ;;  %s2282_s15 = smov [#allocation10]  }
 0x5f7   :  { %v1682_v43 = vsub.f32 %v1630_v39, %v1666_v17  ;;  %v1683_v21 = vsub.f32 %v1631_v50, %v1667_v54  ;;  %v1684_v22 = vsub.f32 %v1632_v60, %v1668_v32  ;;  %v1685_v2 = vmul.f32 %v1677_v40, %v1677_v40  ;;  %s1806_s26 = sshll.u32 %s2282_s15, 4  ;;  %s1807_s26 = int_to_ptr.vmem [resolvable:$true] %s1806_s26 }
 0x5f8   :  { %v1686_v13 = vmul.f32 %v1678_v38, %v1678_v38  ;;  %v1687_v47 = vmul.f32 %v1679_v62, %v1679_v62  ;;  %v1688_v1 = vmul.f32 %v1680_v41, %v1680_v41  ;;  %v1689_v55 = vmul.f32 %v1681_v56, %v1681_v56  ;;  %s2243_s27 = scalar_lea.vmem %s1807_s26, 128  ;;  %p2248_p7 = scmp.lt.s32.totalorder %s1807_s26, %s1807_s26 }
 0x5f9   :  { %v1690_v26 = vmul.f32 %v1682_v43, %v1682_v43  ;;  %v1691_v29 = vmul.f32 %v1683_v21, %v1683_v21  ;;  %v1692_v31 = vmul.f32 %v1684_v22, %v1684_v22  ;;  %p2244_p6 = scmp.ne.s32.totalorder %s1807_s26, %s2243_s27  ;;  %p2249_p8 = scmp.lt.s32.totalorder %s2243_s27, %s2243_s27 }
 0x5fa   :  { %v1701_v27 = vrot.slane %v1686_v13, 7  ;;  %v1703_v28 = vrot.slane %v1687_v47, 6  ;;  %v1705_v46 = vrot.slane %v1688_v1, 5  ;;  %v1707_v0 = vrot.slane %v1689_v55, 4 }
 0x5fb   :  { %v1709_v35 = vrot.slane %v1690_v26, 3  ;;  %v1711_v18 = vrot.slane %v1691_v29, 2  ;;  %v1713_v45 = vrot.slane %v1692_v31, 1  ;;  %p2250_p9 = por %p2249_p8, %p2248_p7 }
 0x5fc   :  { %v1702_v14 = vsel %vm1331_vm5, %v1701_v27, %v1685_v2 }
 0x5fd   :  { %v1704_v19 = vsel %vm1333_vm6, %v1703_v28, %v1702_v14  ;;  %p2251_p10 = pnand %p2250_p9, %p2244_p6 }
 0x5fe   :  { %v1706_v34 = vsel %vm1335_vm7, %v1705_v46, %v1704_v19 }
 0x5ff   :  { %v1708_v48 = vsel %vm1337_vm8, %v1707_v0, %v1706_v34 }
 0x600   :  { %v1710_v57 = vsel %vm1339_vm9, %v1709_v35, %v1708_v48 }
 0x601   :  { %v1712_v58 = vsel %vm1341_vm10, %v1711_v18, %v1710_v57 }
 0x602   :  { %v1714_v7 = vsel %vm1343_vm11, %v1713_v45, %v1712_v58 }
 0x603   :  { %v1716_v63 = vsel %vm155_vm1, %v1714_v7, 0.0 }
 0x604   :  { %1717 = vadd.xlane.f32.xlu0 %v1716_v63 }
 0x68d   :  { %v1718_v3 = vpop.xlane.xlu0 %1717 }
 0x68e   :  { %v1719_v30 = vmul.f32 0.03125, %v1718_v3 }
 0x690   :  { %v1720_v23 = vadd.f32 1e-05, %v1719_v30 }
 0x692   :  { %2161 = vrsqrt.f32 %v1720_v23 }
 0x69f   :  { %v2162_v52 = vpop.eup %2161 }
 0x6a0   :  { %v1723_v53 = vrot.slane %v2162_v52, 1  ;;  %v1724_v59 = vrot.slane %v2162_v52, 2  ;;  %v1725_v39 = vrot.slane %v2162_v52, 3  ;;  %v1726_v8 = vrot.slane %v2162_v52, 4 }
 0x6a1   :  { %v1727_v50 = vrot.slane %v2162_v52, 5  ;;  %v1728_v60 = vrot.slane %v2162_v52, 6  ;;  %v1729_v61 = vrot.slane %v2162_v52, 7  ;;  %v1738_v4 = vmul.f32 %v2162_v52, %v1677_v40 }
 0x6a2   :  { %v1739_v36 = vmul.f32 %v1723_v53, %v1678_v38  ;;  %v1740_v51 = vmul.f32 %v1724_v59, %v1679_v62  ;;  %v1741_v5 = vmul.f32 %v1725_v39, %v1680_v41  ;;  %v1742_v24 = vmul.f32 %v1726_v8, %v1681_v56 }
 0x6a3   :  { %v1743_v20 = vmul.f32 %v1727_v50, %v1682_v43  ;;  %v1744_v6 = vmul.f32 %v1728_v60, %v1683_v21  ;;  %v1745_v25 = vmul.f32 %v1729_v61, %v1684_v22  ;;  %v1753_v9 = vmul.f32 %v1892_v44, %v1738_v4 }
 0x6a4   :  { %v1754_v33 = vmul.f32 %v1892_v44, %v1739_v36  ;;  %v1755_v10 = vmul.f32 %v1892_v44, %v1740_v51  ;;  %v1756_v15 = vmul.f32 %v1892_v44, %v1741_v5  ;;  %v1757_v11 = vmul.f32 %v1892_v44, %v1742_v24 }
 0x6a5   :  { %v1758_v37 = vmul.f32 %v1892_v44, %v1743_v20  ;;  %v1759_v16 = vmul.f32 %v1892_v44, %v1744_v6  ;;  %v1760_v12 = vmul.f32 %v1892_v44, %v1745_v25  ;;  %v1768_v40 = vadd.f32 %v1893_v42, %v1753_v9 }
 0x6a6   :  { %v1769_v49 = vadd.f32 %v1893_v42, %v1754_v33  ;;  %v1770_v17 = vadd.f32 %v1893_v42, %v1755_v10  ;;  %v1771_v54 = vadd.f32 %v1893_v42, %v1756_v15  ;;  %v1772_v32 = vadd.f32 %v1893_v42, %v1757_v11 }
 0x6a7   :  { %v1773_v38 = vadd.f32 %v1893_v42, %v1758_v37  ;;  %v1774_v56 = vadd.f32 %v1893_v42, %v1759_v16  ;;  %v1775_v43 = vadd.f32 %v1893_v42, %v1760_v12 }
 0x6a8   :  { %v1784_v62 = vrot.slane %v1769_v49, 7  ;;  %v1786_v41 = vrot.slane %v1770_v17, 6  ;;  %v1788_v22 = vrot.slane %v1771_v54, 5  ;;  %v1790_v47 = vrot.slane %v1772_v32, 4 }
 0x6a9   :  { %v1792_v55 = vrot.slane %v1773_v38, 3  ;;  %v1794_v26 = vrot.slane %v1774_v56, 2  ;;  %v1796_v28 = vrot.slane %v1775_v43, 1 }
 0x6aa   :  { %v1785_v21 = vsel %vm1331_vm5, %v1784_v62, %v1768_v40 }
 0x6ab   :  { %v1787_v13 = vsel %vm1333_vm6, %v1786_v41, %v1785_v21 }
 0x6ac   :  { %v1789_v1 = vsel %vm1335_vm7, %v1788_v22, %v1787_v13 }
 0x6ad   :  { %v1791_v2 = vsel %vm1337_vm8, %v1790_v47, %v1789_v1 }
 0x6ae   :  { %v1793_v27 = vsel %vm1339_vm9, %v1792_v55, %v1791_v2 }
 0x6af   :  { %v1795_v29 = vsel %vm1341_vm10, %v1794_v26, %v1793_v27 }
 0x6b0   :  { %v1797_v31 = vsel %vm1343_vm11, %v1796_v28, %v1795_v29 }
 0x6b1   :  { %1799 = vst.msk [vmem:[#allocation10] sm:$0xff] %vm155_vm1, %v1797_v31 }
 0x6b2   :  { %2254 = shalt.err (!%p2251_p10)
}
 0x6b3   :  { %1809 = dma.vmem_to_hbm [thread:$0]  %s1807_s26, 128, %s2865_s16, [#allocation4]  }
 0x6b4   :  { %2269 = dma.done.wait [#allocation4], 128  }
 0x6b5   :  { %2270 = vsyncadd [#allocation4], 4294967168 }
 0x6b6   :  { %1813 = vsyncpa [#allocation3], 1 }
 0x6b7   :  { %1814 = vsyncpa [#allocation6], 1 }
 0x6b8   :  { %1815 = vsyncpa [#allocation9], 1 }
 0x6b9   :  { %1816 = vsyncpa [#allocation4], 1 }

</bundles_post_ra>
